<compile_context>
chip_gen: v6e
topology: v6e:2x2x1
jax: 0.10.0
libtpu: 0.0.40
codegen_flags: <defaults>
</compile_context>

<pallas_src>
import functools

import jax
import jax.numpy as jnp
from jax.experimental import pallas as pl
from jax.experimental.pallas import tpu as pltpu


def _round_up(x, m):
    return (x + m - 1) // m * m


def _conv_bn_silu_kernel(x_ref, w_ref, b_ref, o_ref, *, k, w_padded, l_out):
    """Fused kxk (stride-1) conv + folded-BN bias + SiLU for one image.

    x_ref: (L_in, C1)      bf16  row-flattened, spatially padded NHWC image
    w_ref: (k*k, C1, C2p)  bf16  per-tap weights (BN scale already folded in)
    b_ref: (1, C2p)        f32   folded BN bias
    o_ref: (L_out, C2p)          "wide" output rows (one per padded-width col)
    """
    acc = None
    for kh in range(k):
        for kw in range(k):
            d = kh * w_padded + kw                       # static shift per tap
            part = jnp.dot(x_ref[pl.ds(d, l_out), :], w_ref[kh * k + kw],
                           preferred_element_type=jnp.float32)
            acc = part if acc is None else acc + part
    y = acc + b_ref[...]                                 # f32 epilogue
    # SiLU: exp and approx reciprocal both run on the EUP (frees VALU slots).
    sig = pl.reciprocal(1.0 + jnp.exp(-y), approx=True)
    o_ref[...] = (y * sig).astype(o_ref.dtype)


def conv_bn_silu(x_nchw, weight, gamma, beta, run_mean, run_var,
                 *, k=3, s=1, p=None, g=1, eps=1e-5):
    """Forward of Conv (eval-mode BN running stats).  NCHW in / NCHW out."""
    if p is None:
        p = k // 2                                       # autopad
    # TODO(synk): strided (s>1) and grouped (g>1) conv paths are not fused here.
    assert s == 1 and g == 1, "fused kernel covers the s=1, g=1 configuration"

    N, C1, H, W = x_nchw.shape
    C2 = weight.shape[0]
    Hp, Wp = H + 2 * p, W + 2 * p
    Ho, Wo = Hp - k + 1, Wp - k + 1
    C2p = _round_up(C2, 128)                             # lane-dense output
    L_out = Ho * Wp                                      # "wide" output rows
    L_in = _round_up(L_out + (k - 1) * (Wp + 1), 8)      # + tap-shift slack

    # ---- activation: NCHW -> NHWC, spatial halo pad, flatten rows, bf16 ----
    # TODO(synk): keep activations NHWC between layers to drop these transposes.
    x = jnp.transpose(x_nchw, (0, 2, 3, 1))
    xp = jnp.pad(x, ((0, 0), (p, p), (p, p), (0, 0)))
    xf = xp.reshape(N, Hp * Wp, C1)
    xf = jnp.pad(xf, ((0, 0), (0, L_in - Hp * Wp), (0, 0))).astype(jnp.bfloat16)

    # ---- weights: fold BN scale, per-tap layout (k*k, C1, C2p), bf16 ----
    scale = gamma.astype(jnp.float32) * jax.lax.rsqrt(
        run_var.astype(jnp.float32) + eps)
    w_f = weight.astype(jnp.float32) * scale[:, None, None, None]
    w_taps = jnp.transpose(w_f, (2, 3, 1, 0)).reshape(k * k, C1, C2)
    w_taps = jnp.pad(w_taps, ((0, 0), (0, 0), (0, C2p - C2))).astype(jnp.bfloat16)
    bias = beta.astype(jnp.float32) - run_mean.astype(jnp.float32) * scale
    bias = jnp.pad(bias, (0, C2p - C2)).reshape(1, C2p)

    # VMEM budget: double-buffered in/out blocks + resident weights/bias.
    per_step = (2 * (L_in * C1 * 2 + L_out * C2p * 4)
                + k * k * C1 * C2p * 2 + C2p * 4)
    vmem_limit = int(min(max(4 * per_step, 16 * 2**20), 64 * 2**20))

    kernel = functools.partial(_conv_bn_silu_kernel,
                               k=k, w_padded=Wp, l_out=L_out)
    out_wide = pl.pallas_call(
        kernel,
        out_shape=jax.ShapeDtypeStruct((N, L_out, C2p), x_nchw.dtype),
        grid_spec=pltpu.PrefetchScalarGridSpec(
            num_scalar_prefetch=0,
            grid=(N,),
            in_specs=[
                pl.BlockSpec((None, L_in, C1), lambda n: (n, 0, 0)),
                pl.BlockSpec((k * k, C1, C2p), lambda n: (0, 0, 0)),
                pl.BlockSpec((1, C2p), lambda n: (0, 0)),
            ],
            out_specs=pl.BlockSpec((None, L_out, C2p), lambda n: (n, 0, 0)),
        ),
        compiler_params=pltpu.CompilerParams(
            dimension_semantics=("parallel",),
            vmem_limit_bytes=vmem_limit),
    )(xf, w_taps, bias)

    # wide rows -> (N, Ho, Wp, C2p); drop padded cols/channels; back to NCHW.
    out = out_wide.reshape(N, Ho, Wp, C2p)[:, :, :Wo, :C2]
    return jnp.transpose(out, (0, 3, 1, 2))


def _reference(x, weight, gamma, beta, mean, var, eps, s, p, *, quantize):
    scale = gamma / jnp.sqrt(var + eps)
    bias = beta - mean * scale
    w_f = weight * scale[:, None, None, None]
    if quantize:  # same bf16 operand rounding as the kernel's MXU path
        x = x.astype(jnp.bfloat16).astype(jnp.float32)
        w_f = w_f.astype(jnp.bfloat16).astype(jnp.float32)
    y = jax.lax.conv_general_dilated(
        x, w_f, window_strides=(s, s), padding=[(p, p), (p, p)],
        dimension_numbers=("NCHW", "OIHW", "NCHW"),
        precision=jax.lax.Precision.HIGHEST)
    y = y + bias[None, :, None, None]
    return y * jax.nn.sigmoid(y)


if __name__ == "__main__":
    # Conv(c1=4, c2=8, k=3, s=1) -> autopad p=1, groups=1, act=SiLU
    c1, c2, k, s, p, eps = 4, 8, 3, 1, 1, 1e-5
    N, H, W = 2, 16, 16

    key = jax.random.PRNGKey(0)
    k_x, k_w, k_g, k_b, k_m, k_v = jax.random.split(key, 6)

    x = jax.random.normal(k_x, (N, c1, H, W), dtype=jnp.float32)
    weight = jax.random.normal(k_w, (c2, c1, k, k), dtype=jnp.float32) * 0.1
    gamma = 1.0 + 0.1 * jax.random.normal(k_g, (c2,), dtype=jnp.float32)
    beta = 0.1 * jax.random.normal(k_b, (c2,), dtype=jnp.float32)
    run_mean = 0.1 * jax.random.normal(k_m, (c2,), dtype=jnp.float32)
    run_var = jax.random.uniform(k_v, (c2,), minval=0.5, maxval=1.5,
                                 dtype=jnp.float32)

    out = conv_bn_silu(x, weight, gamma, beta, run_mean, run_var,
                       k=k, s=s, p=p, eps=eps)
    out = jax.block_until_ready(out)
    assert out.shape == (N, c2, H, W), out.shape

    # Tight check against a reference using identical bf16-rounded operands.
    ref_q = _reference(x, weight, gamma, beta, run_mean, run_var, eps, s, p,
                       quantize=True)
    assert jnp.allclose(out, ref_q, rtol=2e-3, atol=2e-3), \
        "mismatch vs bf16-quantized reference"

    # Loose sanity check against the full-f32 reference (bf16 rounding only).
    ref_f = _reference(x, weight, gamma, beta, run_mean, run_var, eps, s, p,
                       quantize=False)
    assert jnp.allclose(out, ref_f, rtol=5e-2, atol=5e-2), \
        "mismatch vs f32 reference"

    print("KERNEL_OK")
</pallas_src>

<mosaic_0001>
module attributes {stable_mosaic.version = 11 : i64} {
  func.func @_conv_bn_silu_kernel(%arg0: i32, %arg1: memref<1x328x4xbf16, #tpu.memory_space<vmem>>, %arg2: memref<9x4x128xbf16, #tpu.memory_space<vmem>>, %arg3: memref<1x128xf32, #tpu.memory_space<vmem>>, %arg4: memref<1x288x128xf32, #tpu.memory_space<vmem>>) attributes {dimension_semantics = [#tpu.dimension_semantics<parallel>], iteration_bounds = array<i64: 2>, scalar_prefetch = 0 : i64, scratch_operands = 0 : i64, tpu.core_type = #tpu.core_type<tc>, window_params = [{transform_indices = @transform_0, window_bounds = array<i64: 1, 328, 4>}, {pipeline_mode = #tpu.pipeline_mode<synchronous>, transform_indices = @transform_1, window_bounds = array<i64: 9, 4, 128>}, {pipeline_mode = #tpu.pipeline_mode<synchronous>, transform_indices = @transform_2, window_bounds = array<i64: 1, 128>}, {transform_indices = @transform_3, window_bounds = array<i64: 1, 288, 128>}]} {
    %c0 = arith.constant 0 : index
    %c0_0 = arith.constant 0 : index
    %c0_1 = arith.constant 0 : index
    %0 = vector.load %arg1[%c0, %c0_0, %c0_1] : memref<1x328x4xbf16, #tpu.memory_space<vmem>>, vector<1x288x4xbf16>
    %1 = vector.shape_cast %0 : vector<1x288x4xbf16> to vector<288x4xbf16>
    %c0_2 = arith.constant 0 : index
    %c0_3 = arith.constant 0 : index
    %c0_4 = arith.constant 0 : index
    %2 = vector.load %arg2[%c0_2, %c0_3, %c0_4] : memref<9x4x128xbf16, #tpu.memory_space<vmem>>, vector<1x4x128xbf16>
    %3 = vector.shape_cast %2 : vector<1x4x128xbf16> to vector<4x128xbf16>
    %cst = arith.constant dense<0.000000e+00> : vector<288x128xf32>
    %4 = tpu.matmul %1, %3, %cst {dimension_numbers = #tpu.dot_dimension_numbers<[1], [0], [0], [1], [0, 0, 1, 1], [], []>} : vector<288x4xbf16>, vector<4x128xbf16>, vector<288x128xf32> -> vector<288x128xf32>
    %c0_5 = arith.constant 0 : index
    %c1 = arith.constant 1 : index
    %c0_6 = arith.constant 0 : index
    %5 = vector.load %arg1[%c0_5, %c1, %c0_6] : memref<1x328x4xbf16, #tpu.memory_space<vmem>>, vector<1x288x4xbf16>
    %6 = vector.shape_cast %5 : vector<1x288x4xbf16> to vector<288x4xbf16>
    %c1_7 = arith.constant 1 : index
    %c0_8 = arith.constant 0 : index
    %c0_9 = arith.constant 0 : index
    %7 = vector.load %arg2[%c1_7, %c0_8, %c0_9] : memref<9x4x128xbf16, #tpu.memory_space<vmem>>, vector<1x4x128xbf16>
    %8 = vector.shape_cast %7 : vector<1x4x128xbf16> to vector<4x128xbf16>
    %cst_10 = arith.constant dense<0.000000e+00> : vector<288x128xf32>
    %9 = tpu.matmul %6, %8, %cst_10 {dimension_numbers = #tpu.dot_dimension_numbers<[1], [0], [0], [1], [0, 0, 1, 1], [], []>} : vector<288x4xbf16>, vector<4x128xbf16>, vector<288x128xf32> -> vector<288x128xf32>
    %10 = arith.addf %4, %9 : vector<288x128xf32>
    %c0_11 = arith.constant 0 : index
    %c2 = arith.constant 2 : index
    %c0_12 = arith.constant 0 : index
    %11 = vector.load %arg1[%c0_11, %c2, %c0_12] : memref<1x328x4xbf16, #tpu.memory_space<vmem>>, vector<1x288x4xbf16>
    %12 = vector.shape_cast %11 : vector<1x288x4xbf16> to vector<288x4xbf16>
    %c2_13 = arith.constant 2 : index
    %c0_14 = arith.constant 0 : index
    %c0_15 = arith.constant 0 : index
    %13 = vector.load %arg2[%c2_13, %c0_14, %c0_15] : memref<9x4x128xbf16, #tpu.memory_space<vmem>>, vector<1x4x128xbf16>
    %14 = vector.shape_cast %13 : vector<1x4x128xbf16> to vector<4x128xbf16>
    %cst_16 = arith.constant dense<0.000000e+00> : vector<288x128xf32>
    %15 = tpu.matmul %12, %14, %cst_16 {dimension_numbers = #tpu.dot_dimension_numbers<[1], [0], [0], [1], [0, 0, 1, 1], [], []>} : vector<288x4xbf16>, vector<4x128xbf16>, vector<288x128xf32> -> vector<288x128xf32>
    %16 = arith.addf %10, %15 : vector<288x128xf32>
    %c0_17 = arith.constant 0 : index
    %c18 = arith.constant 18 : index
    %c0_18 = arith.constant 0 : index
    %17 = vector.load %arg1[%c0_17, %c18, %c0_18] : memref<1x328x4xbf16, #tpu.memory_space<vmem>>, vector<1x288x4xbf16>
    %18 = vector.shape_cast %17 : vector<1x288x4xbf16> to vector<288x4xbf16>
    %c3 = arith.constant 3 : index
    %c0_19 = arith.constant 0 : index
    %c0_20 = arith.constant 0 : index
    %19 = vector.load %arg2[%c3, %c0_19, %c0_20] : memref<9x4x128xbf16, #tpu.memory_space<vmem>>, vector<1x4x128xbf16>
    %20 = vector.shape_cast %19 : vector<1x4x128xbf16> to vector<4x128xbf16>
    %cst_21 = arith.constant dense<0.000000e+00> : vector<288x128xf32>
    %21 = tpu.matmul %18, %20, %cst_21 {dimension_numbers = #tpu.dot_dimension_numbers<[1], [0], [0], [1], [0, 0, 1, 1], [], []>} : vector<288x4xbf16>, vector<4x128xbf16>, vector<288x128xf32> -> vector<288x128xf32>
    %22 = arith.addf %16, %21 : vector<288x128xf32>
    %c0_22 = arith.constant 0 : index
    %c19 = arith.constant 19 : index
    %c0_23 = arith.constant 0 : index
    %23 = vector.load %arg1[%c0_22, %c19, %c0_23] : memref<1x328x4xbf16, #tpu.memory_space<vmem>>, vector<1x288x4xbf16>
    %24 = vector.shape_cast %23 : vector<1x288x4xbf16> to vector<288x4xbf16>
    %c4 = arith.constant 4 : index
    %c0_24 = arith.constant 0 : index
    %c0_25 = arith.constant 0 : index
    %25 = vector.load %arg2[%c4, %c0_24, %c0_25] : memref<9x4x128xbf16, #tpu.memory_space<vmem>>, vector<1x4x128xbf16>
    %26 = vector.shape_cast %25 : vector<1x4x128xbf16> to vector<4x128xbf16>
    %cst_26 = arith.constant dense<0.000000e+00> : vector<288x128xf32>
    %27 = tpu.matmul %24, %26, %cst_26 {dimension_numbers = #tpu.dot_dimension_numbers<[1], [0], [0], [1], [0, 0, 1, 1], [], []>} : vector<288x4xbf16>, vector<4x128xbf16>, vector<288x128xf32> -> vector<288x128xf32>
    %28 = arith.addf %22, %27 : vector<288x128xf32>
    %c0_27 = arith.constant 0 : index
    %c20 = arith.constant 20 : index
    %c0_28 = arith.constant 0 : index
    %29 = vector.load %arg1[%c0_27, %c20, %c0_28] : memref<1x328x4xbf16, #tpu.memory_space<vmem>>, vector<1x288x4xbf16>
    %30 = vector.shape_cast %29 : vector<1x288x4xbf16> to vector<288x4xbf16>
    %c5 = arith.constant 5 : index
    %c0_29 = arith.constant 0 : index
    %c0_30 = arith.constant 0 : index
    %31 = vector.load %arg2[%c5, %c0_29, %c0_30] : memref<9x4x128xbf16, #tpu.memory_space<vmem>>, vector<1x4x128xbf16>
    %32 = vector.shape_cast %31 : vector<1x4x128xbf16> to vector<4x128xbf16>
    %cst_31 = arith.constant dense<0.000000e+00> : vector<288x128xf32>
    %33 = tpu.matmul %30, %32, %cst_31 {dimension_numbers = #tpu.dot_dimension_numbers<[1], [0], [0], [1], [0, 0, 1, 1], [], []>} : vector<288x4xbf16>, vector<4x128xbf16>, vector<288x128xf32> -> vector<288x128xf32>
    %34 = arith.addf %28, %33 : vector<288x128xf32>
    %c0_32 = arith.constant 0 : index
    %c36 = arith.constant 36 : index
    %c0_33 = arith.constant 0 : index
    %35 = vector.load %arg1[%c0_32, %c36, %c0_33] : memref<1x328x4xbf16, #tpu.memory_space<vmem>>, vector<1x288x4xbf16>
    %36 = vector.shape_cast %35 : vector<1x288x4xbf16> to vector<288x4xbf16>
    %c6 = arith.constant 6 : index
    %c0_34 = arith.constant 0 : index
    %c0_35 = arith.constant 0 : index
    %37 = vector.load %arg2[%c6, %c0_34, %c0_35] : memref<9x4x128xbf16, #tpu.memory_space<vmem>>, vector<1x4x128xbf16>
    %38 = vector.shape_cast %37 : vector<1x4x128xbf16> to vector<4x128xbf16>
    %cst_36 = arith.constant dense<0.000000e+00> : vector<288x128xf32>
    %39 = tpu.matmul %36, %38, %cst_36 {dimension_numbers = #tpu.dot_dimension_numbers<[1], [0], [0], [1], [0, 0, 1, 1], [], []>} : vector<288x4xbf16>, vector<4x128xbf16>, vector<288x128xf32> -> vector<288x128xf32>
    %40 = arith.addf %34, %39 : vector<288x128xf32>
    %c0_37 = arith.constant 0 : index
    %c37 = arith.constant 37 : index
    %c0_38 = arith.constant 0 : index
    %41 = vector.load %arg1[%c0_37, %c37, %c0_38] : memref<1x328x4xbf16, #tpu.memory_space<vmem>>, vector<1x288x4xbf16>
    %42 = vector.shape_cast %41 : vector<1x288x4xbf16> to vector<288x4xbf16>
    %c7 = arith.constant 7 : index
    %c0_39 = arith.constant 0 : index
    %c0_40 = arith.constant 0 : index
    %43 = vector.load %arg2[%c7, %c0_39, %c0_40] : memref<9x4x128xbf16, #tpu.memory_space<vmem>>, vector<1x4x128xbf16>
    %44 = vector.shape_cast %43 : vector<1x4x128xbf16> to vector<4x128xbf16>
    %cst_41 = arith.constant dense<0.000000e+00> : vector<288x128xf32>
    %45 = tpu.matmul %42, %44, %cst_41 {dimension_numbers = #tpu.dot_dimension_numbers<[1], [0], [0], [1], [0, 0, 1, 1], [], []>} : vector<288x4xbf16>, vector<4x128xbf16>, vector<288x128xf32> -> vector<288x128xf32>
    %46 = arith.addf %40, %45 : vector<288x128xf32>
    %c0_42 = arith.constant 0 : index
    %c38 = arith.constant 38 : index
    %c0_43 = arith.constant 0 : index
    %47 = vector.load %arg1[%c0_42, %c38, %c0_43] : memref<1x328x4xbf16, #tpu.memory_space<vmem>>, vector<1x288x4xbf16>
    %48 = vector.shape_cast %47 : vector<1x288x4xbf16> to vector<288x4xbf16>
    %c8 = arith.constant 8 : index
    %c0_44 = arith.constant 0 : index
    %c0_45 = arith.constant 0 : index
    %49 = vector.load %arg2[%c8, %c0_44, %c0_45] : memref<9x4x128xbf16, #tpu.memory_space<vmem>>, vector<1x4x128xbf16>
    %50 = vector.shape_cast %49 : vector<1x4x128xbf16> to vector<4x128xbf16>
    %cst_46 = arith.constant dense<0.000000e+00> : vector<288x128xf32>
    %51 = tpu.matmul %48, %50, %cst_46 {dimension_numbers = #tpu.dot_dimension_numbers<[1], [0], [0], [1], [0, 0, 1, 1], [], []>} : vector<288x4xbf16>, vector<4x128xbf16>, vector<288x128xf32> -> vector<288x128xf32>
    %52 = arith.addf %46, %51 : vector<288x128xf32>
    %c0_47 = arith.constant 0 : index
    %c0_48 = arith.constant 0 : index
    %53 = vector.load %arg3[%c0_47, %c0_48] : memref<1x128xf32, #tpu.memory_space<vmem>>, vector<1x128xf32>
    %54 = vector.broadcast %53 : vector<1x128xf32> to vector<288x128xf32>
    %55 = arith.addf %52, %54 : vector<288x128xf32>
    %cst_49 = arith.constant 0.000000e+00 : f32
    %56 = vector.broadcast %cst_49 : f32 to vector<288x128xf32>
    %57 = arith.subf %56, %55 : vector<288x128xf32>
    %58 = math.exp %57 : vector<288x128xf32>
    %cst_50 = arith.constant 1.000000e+00 : f32
    %59 = vector.broadcast %cst_50 : f32 to vector<288x128xf32>
    %60 = arith.addf %59, %58 : vector<288x128xf32>
    %61 = tpu.reciprocal %60 {approx = true} : vector<288x128xf32> -> vector<288x128xf32>
    %62 = arith.mulf %55, %61 : vector<288x128xf32>
    %c0_51 = arith.constant 0 : index
    %c0_52 = arith.constant 0 : index
    %c0_53 = arith.constant 0 : index
    %63 = vector.load %arg4[%c0_51, %c0_52, %c0_53] : memref<1x288x128xf32, #tpu.memory_space<vmem>>, vector<1x288x128xf32>
    %64 = vector.shape_cast %63 : vector<1x288x128xf32> to vector<288x128xf32>
    %65 = vector.shape_cast %62 : vector<288x128xf32> to vector<1x288x128xf32>
    tpu.vector_store %arg4[%c0_51, %c0_52, %c0_53], %65 {strides = array<i32>} : memref<1x288x128xf32, #tpu.memory_space<vmem>>, vector<1x288x128xf32>,
    return
  }
  func.func @transform_0(%arg0: i32) -> (i32, i32, i32) {
    %c0_i32 = arith.constant 0 : i32
    %c0_i32_0 = arith.constant 0 : i32
    %c0_i32_1 = arith.constant 0 : i32
    return %arg0, %c0_i32, %c0_i32_0 : i32, i32, i32
  }
  func.func @transform_1(%arg0: i32) -> (i32, i32, i32) {
    %c0_i32 = arith.constant 0 : i32
    %c0_i32_0 = arith.constant 0 : i32
    %c0_i32_1 = arith.constant 0 : i32
    %c0_i32_2 = arith.constant 0 : i32
    return %c0_i32, %c0_i32_0, %c0_i32_1 : i32, i32, i32
  }
  func.func @transform_2(%arg0: i32) -> (i32, i32) {
    %c0_i32 = arith.constant 0 : i32
    %c0_i32_0 = arith.constant 0 : i32
    %c0_i32_1 = arith.constant 0 : i32
    return %c0_i32, %c0_i32_0 : i32, i32
  }
  func.func @transform_3(%arg0: i32) -> (i32, i32, i32) {
    %c0_i32 = arith.constant 0 : i32
    %c0_i32_0 = arith.constant 0 : i32
    %c0_i32_1 = arith.constant 0 : i32
    return %arg0, %c0_i32, %c0_i32_0 : i32, i32, i32
  }
}

</mosaic_0001>

<bundles_post_ra>
// kernel: tpu_custom_call.1
= control target key start
LH: loop header
LB: loop body
LE: loop exit
PB: predicated region body
PF: predicated region fallthrough
CT: control target
= control target key end

     0   :  { %8 = vsyncpa [#allocation3], 0  ;;  %s6726_s0 = inlined_call_operand.vmem [shape: bf16[2,328,4], index: 0, kind: input, shape index: {}]   ;;  %s6727_s1 = inlined_call_operand.vmem [shape: bf16[9,4,128], index: 1, kind: input, shape index: {}]   ;;  %s6728_s2 = inlined_call_operand.vmem [shape: f32[1,128], index: 2, kind: input, shape index: {}]   ;;  %s6729_s3 = inlined_call_operand.hbm [shape: f32[2,288,128], index: 3, kind: output, shape index: {}]  }
   0x1   :  { %10 = vsyncpa [#allocation3 + $0x1], 0  ;;  %s5090_s12 = smov 0   ;;  %s5092_s13 = smov 0  }
   0x2   :  { %s5094_s14 = smov 0   ;;  %s5096_s15 = smov 0  }
   0x3 LB: > { %s5111_s16 = sadd.s32 4294967295, %s5065_s15   ;;  %s3989_s17 = sadd.s32 4294967294, %s5065_s15   ;;  %s5065_s15 = sphi %s5096_s15, %s6773_s15   ;;  %s5061_s14 = sphi %s5094_s14, %s6772_s14   ;;  %s5057_s13 = sphi %s5092_s13, %s6771_s13   ;;  %s5053_s12 = sphi %s5090_s12, %s6770_s12  }
   0x4   : > { %s5115_s18 = sadd.s32 1, %s5065_s15   ;;  %s91_s19 = sadd.s32 1, %s5061_s14 }
   0x5   : > { %s88_s20 = ssub.s32 %s5065_s15, %s5115_s18  ;;  %p101_p0 = scmp.ne.s32.totalorder %s5061_s14, %s5057_s13 }
   0x6   : > { %p89_p1 = scmp.eq.s32.totalorder %s88_s20, 0  ;;  %p102_p2 = scmp.eq.s32.totalorder %s5111_s16, 1 }
   0x7   : > { %p107_p3 = scmp.ne.s32.totalorder %s5057_s13, %s5053_s12  ;;  %p108_p4 = scmp.eq.s32.totalorder %s3989_s17, 1 }
   0x8   : > { %s5126_s21 = scalar_select %p89_p1, %s5061_s14, %s91_s19  }
   0x9   : > { %p5128_p5 = por %p102_p2, %p101_p0  ;;  %p5132_p6 = por %p108_p4, %p107_p3 }
   0xa   : > { %p3992_p7 = scmp.ge.s32.totalorder %s5065_s15, 1  ;;  %p140_p8 = scmp.lt.s32.totalorder %s5065_s15, 3 }
   0xc   : > { %p141_p9 = pnand %p3992_p7, %p140_p8 }
   0xe   : > { %144 = sbr.rel (%p141_p9) target bundleno = 615 (0x267), region = 32 }
  0x13   : > { %v3994_v0 = vld [vmem:[%s6727_s1 + $0x2] sm:$0x3]  ;;  %vm507_vm0 = vcmask 1041408   ;;  %p164_p10 = scmp.lt.s32.totalorder %s5111_s16, 1  ;;  %v4050_v2 = vld [vmem:[%s6727_s1 + $0x4] sm:$0x3] }
  0x14   : > { %4745 = vmatprep.subr.msk.bf16.mxu0 %vm507_vm0, %v3994_v0  ;;  %4746 = vmatprep.subr.msk.bf16.mxu1 %vm507_vm0, %v3994_v0  ;;  %v509_v1 = vsel %vm507_vm0, %v3994_v0, 0  ;;  %v206_v3 = vld [vmem:[%s6727_s1] sm:$0x3]  ;;  %vm303_vm1 = vsmask.f32 7424  ;;  %vm452_vm2 = vcmask 31744  }
  0x15   : > { %4402 = vmatpush3.bf16.msra.mxu0 %v509_v1  ;;  %4744 = vmatpush3.bf16.msra.mxu1 %v509_v1  ;;  %s165_s30 = scalar_select %p164_p10, %s5111_s16, 1  ;;  %v1003_v8 = vsel %vm507_vm0, %v4050_v2, 0  ;;  %v725_v16 = vsel %vm507_vm0, %v206_v3, 0  ;;  %v5202_v33 = vld [vmem:[%s6727_s1 + $0x8] sm:$0x3]  ;;  %vm910_vm3 = vcmask 1046528  }
  0x16   : > { %4748 = vmatprep.subr.msk.bf16.mxu0 %vm507_vm0, %v4050_v2  ;;  %4747 = vmatprep.subr.msk.bf16.mxu1 %vm507_vm0, %v206_v3  ;;  %v5222_v45 = vld [vmem:[%s6727_s1 + $0x6] sm:$0x3]  ;;  %vm2110_vm4 = vcmask 1045504   ;;  %vm1663_vm5 = vsmask.f32 6400  ;;  %vm3310_vm6 = vcmask 1044480  }
  0x17   : > { %s4756_s4 = smul.u32 164, %s165_s30  ;;  %vm2863_vm7 = vsmask.f32 5376  ;;  %s5067_s19 = smov [#allocation2]  }
  0x18   : > { %s5009_s20 = sshll.u32 %s5067_s19, 4  ;;  %s5010_s20 = int_to_ptr.vmem [resolvable:$false] %s5009_s20 }
  0x19   : > { %s5157_s7 = scalar_lea.vmem %s6726_s0, %s4756_s4  ;;  %s161_s4 = sand.u32 1, %s5057_s13  }
  0x1a   : > { %v170_v4 = vld [vmem:[%s5157_s7] sm:$0xf]  ;;  %v5161_v5 = vld [vmem:[%s5157_s7 + $0x4] sm:$0xf]  ;;  %v5167_v7 = vld [vmem:[%s5157_s7 + $0x8] sm:$0xff]   ;;  %s6482_s5 = smul.u32 288, %s161_s4 }
  0x1b   : > { %v5164_v6 = vcombine.low %v170_v4, %v5161_v5  ;;  %v312_v11 = vshll.u32 %v5167_v7, 16  ;;  %v316_v12 = vshrl.u32 %v5167_v7, 16  ;;  %v5175_v13 = vld [vmem:[%s5157_s7 + $0x50] sm:$0xff]   ;;  %v5178_v14 = vld [vmem:[%s5157_s7 + $0x58] sm:$0xff]   ;;  %v5190_v24 = vld [vmem:[%s5157_s7 + $0x60] sm:$0xff]   ;;  %s5011_s24 = scalar_lea.vmem %s5010_s20, 9216 }
  0x1c   : > { %v5181_v15 = vld [vmem:[%s5157_s7 + $0x10] sm:$0xff]   ;;  %v384_v19 = vshll.u32 %v5175_v13, 16  ;;  %v388_v20 = vshrl.u32 %v5175_v13, 16  ;;  %v392_v21 = vshll.u32 %v5178_v14, 16  ;;  %v396_v22 = vshrl.u32 %v5178_v14, 16  ;;  %v5195_v28 = vld [vmem:[%s5157_s7 + $0x18] sm:$0xff]  }
  0x1d   : > { %v305_v9 = vshrl.u32 %v5164_v6, 16  ;;  %v307_v10 = vshll.u32 %v5164_v6, 16  ;;  %v314_v18 = vrot.slane %v312_v11, 1  ;;  %v320_v23 = vshll.u32 %v5181_v15, 16  ;;  %v5208_v37 = vld [vmem:[%s5157_s7 + $0x68] sm:$0xff]   ;;  %v5212_v39 = vld [vmem:[%s5157_s7 + $0x20] sm:$0xff]  }
  0x1e   : > { %v5192_v27 = vrot.slane %v384_v19, 1  ;;  %v394_v29 = vrot.slane %v392_v21, 1  ;;  %v400_v31 = vshll.u32 %v5190_v24, 16  ;;  %v324_v32 = vshrl.u32 %v5181_v15, 16  ;;  %v5217_v44 = vld [vmem:[%s5157_s7 + $0x70] sm:$0xff]   ;;  %v5229_v50 = vld [vmem:[%s5157_s7 + $0x28] sm:$0xff]  }
  0x1f   : > { %v309_v17 = vrot.slane %v307_v10, 1  ;;  %v318_v26 = vor.u32 %v316_v12, %v314_v18  ;;  %v322_v30 = vrot.slane %v320_v23, 1  ;;  %v328_v36 = vshll.u32 %v5195_v28, 16  ;;  %v5244_v62 = vld [vmem:[%s5157_s7 + $0x78] sm:$0xff]   ;;  %v5254_v10 = vld [vmem:[%s5157_s7 + $0x30] sm:$0xff]   ;;  %v5257_v11 = vld [vmem:[%s5157_s7 + $0x80] sm:$0xff]  }
  0x20   : > { %v390_v35 = vor.u32 %v388_v20, %v5192_v27  ;;  %v404_v38 = vshrl.u32 %v5190_v24, 16  ;;  %v398_v40 = vor.u32 %v396_v22, %v394_v29  ;;  %v402_v42 = vrot.slane %v400_v31, 1  ;;  %v5266_v23 = vld [vmem:[%s5157_s7 + $0x38] sm:$0xff]   ;;  %s6504_s6 = scalar_lea.vmem [#allocation2], %s6482_s5 }
  0x21   : > { %v310_v25 = vor.u32 %v309_v17, %v305_v9  ;;  %v323_v41 = vsel %vm303_vm1, %v318_v26, %v322_v30  ;;  %v326_v43 = vor.u32 %v324_v32, %v322_v30  ;;  %v330_v47 = vrot.slane %v328_v36, 1  ;;  %v5271_v26 = vld [vmem:[%s5157_s7 + $0x88] sm:$0xff]   ;;  %s3927_s8 = sshll.u32 %s6504_s6, 4  ;;  %s6681_s8 = int_to_ptr.vmem [resolvable:$true] %s3927_s8 }
  0x22   : > { %v395_v46 = vsel %vm303_vm1, %v390_v35, %v394_v29  ;;  %v408_v48 = vshll.u32 %v5208_v37, 16  ;;  %v332_v49 = vshrl.u32 %v5195_v28, 16  ;;  %v403_v51 = vsel %vm303_vm1, %v398_v40, %v402_v42  ;;  %v5283_v40 = vld [vmem:[%s5157_s7 + $0x48] sm:$0xff]   ;;  %s5005_s17 = scalar_lea.vmem %s6681_s8, 4608  ;;  %p5012_p0 = scmp.lt.s32.totalorder %s6681_s8, %s5010_s20 }
  0x23   : > { %v315_v34 = vsel %vm303_vm1, %v310_v25, %v314_v18  ;;  %4423 = vmatprep.mubr.msk.bf16.mxu1 %vm452_vm2, %v395_v46  ;;  %v406_v52 = vor.u32 %v404_v38, %v402_v42  ;;  %v336_v53 = vshll.u32 %v5212_v39, 16  ;;  %v412_v54 = vshrl.u32 %v5208_v37, 16  ;;  %v5280_v38 = vld [vmem:[%s5157_s7 + $0x40] sm:$0xff]   ;;  %p5006_p11 = scmp.ne.s32.totalorder %s6681_s8, %s5005_s17  ;;  %p5013_p1 = scmp.lt.s32.totalorder %s5011_s24, %s5005_s17 }
  0x24   : > { %4403 = vmatprep.mubr.msk.bf16.mxu0 %vm452_vm2, %v315_v34  ;;  %4424 = vmatmul.mubr.msk.bf16.vlgmr.msra.gmra.mxu1 %vm452_vm2, %v403_v51  ;;  %v331_v55 = vsel %vm303_vm1, %v326_v43, %v330_v47  ;;  %v410_v56 = vrot.slane %v408_v48, 1  ;;  %v334_v57 = vor.u32 %v332_v49, %v330_v47  ;;  %v416_v58 = vshll.u32 %v5217_v44, 16  ;;  %v4816_v43 = vld [vmem:[%s5157_s7 + $0x90] ss:$0 sps:$4 sm:$0x11]  }
  0x25   : > { %4404 = vmatmul.mubr.msk.bf16.vlgmr.msra.gmra.mxu0 %vm452_vm2, %v323_v41  ;;  %4440 = vmatpush3.bf16.msra.mxu1 %v725_v16  ;;  %v338_v59 = vrot.slane %v336_v53, 1  ;;  %v340_v60 = vshrl.u32 %v5212_v39, 16  ;;  %v344_v61 = vshll.u32 %v5229_v50, 16  ;;  %v420_v2 = vshrl.u32 %v5217_v44, 16  ;;  %p5007_p12 = pnand %p5006_p11, %p5128_p5  ;;  %p5014_p2 = por %p5013_p1, %p5012_p0 }
  0x26   : > { %4478 = vmatpush3.bf16.msra.mxu0 %v1003_v8  ;;  %4407 = vmatprep.mubr.msk.bf16.mxu0 %vm452_vm2, %v331_v55  ;;  %v411_v63 = vsel %vm303_vm1, %v406_v52, %v410_v56  ;;  %v414_v0 = vor.u32 %v412_v54, %v410_v56  ;;  %v418_v1 = vrot.slane %v416_v58, 1  ;;  %v424_v9 = vshll.u32 %v5244_v62, 16 }
  0x27   : > { %4750 = vmatprep.subr.msk.bf16.mxu0 %vm507_vm0, %v5202_v33  ;;  %4749 = vmatprep.subr.msk.bf16.mxu1 %vm507_vm0, %v5222_v45  ;;  %v339_v3 = vsel %vm303_vm1, %v334_v57, %v338_v59  ;;  %v342_v4 = vor.u32 %v340_v60, %v338_v59  ;;  %v346_v8 = vrot.slane %v344_v61, 1  ;;  %v348_v17 = vshrl.u32 %v5229_v50, 16  ;;  %p5008_p13 = pneg %p5007_p12 }
  0x28   : > { %4427 = vmatprep.mubr.msk.bf16.mxu1 %vm452_vm2, %v411_v63  ;;  %v419_v12 = vsel %vm303_vm1, %v414_v0, %v418_v1  ;;  %v422_v16 = vor.u32 %v420_v2, %v418_v1  ;;  %v428_v18 = vshrl.u32 %v5244_v62, 16  ;;  %v426_v20 = vrot.slane %v424_v9, 1  ;;  %v904_v63 = vld [vmem:[%s5157_s7] sm:$0xe] }
  0x29   : > { %v347_v19 = vsel %vm303_vm1, %v342_v4, %v346_v8  ;;  %v352_v21 = vshll.u32 %v5254_v10, 16  ;;  %v432_v22 = vshll.u32 %v5257_v11, 16  ;;  %v356_v25 = vshrl.u32 %v5254_v10, 16  ;;  %p5015_p3 = pnand %p5014_p2, %p5008_p13 }
  0x2a   : > { %v427_v29 = vsel %vm303_vm1, %v422_v16, %v426_v20  ;;  %v350_v30 = vor.u32 %v348_v17, %v346_v8  ;;  %v360_v34 = vshll.u32 %v5266_v23, 16  ;;  %v436_v35 = vshrl.u32 %v5257_v11, 16 }
  0x2b   : > { %v354_v31 = vrot.slane %v352_v21, 1  ;;  %v434_v32 = vrot.slane %v432_v22, 1  ;;  %v440_v36 = vshll.u32 %v5271_v26, 16  ;;  %v430_v41 = vor.u32 %v428_v18, %v426_v20 }
  0x2c   : > { %4428 = vmatmul.mubr.msk.bf16.gmra.mxu1 %vm452_vm2, %v419_v12  ;;  %v362_v46 = vrot.slane %v360_v34, 1  ;;  %v368_v49 = vshll.u32 %v5280_v38, 16  ;;  %v364_v52 = vshrl.u32 %v5266_v23, 16  ;;  %v372_v54 = vshrl.u32 %v5280_v38, 16 }
  0x2d   : > { %4408 = vmatmul.mubr.msk.bf16.gmra.mxu0 %vm452_vm2, %v339_v3  ;;  %4431 = vmatprep.mubr.msk.bf16.mxu1 %vm452_vm2, %v427_v29  ;;  %v358_v42 = vor.u32 %v356_v25, %v354_v31  ;;  %v438_v47 = vor.u32 %v436_v35, %v434_v32  ;;  %v442_v48 = vrot.slane %v440_v36, 1  ;;  %v355_v51 = vsel %vm303_vm1, %v350_v30, %v354_v31 }
  0x2e   : > { %4411 = vmatprep.mubr.msk.bf16.mxu0 %vm452_vm2, %v347_v19  ;;  %v376_v55 = vshll.u32 %v5283_v40, 16  ;;  %v435_v56 = vsel %vm303_vm1, %v430_v41, %v434_v32  ;;  %v444_v57 = vshrl.u32 %v5271_v26, 16  ;;  %v448_v58 = vshll.u32 %v4816_v43, 16 }
  0x2f   : > { %v363_v53 = vsel %vm303_vm1, %v358_v42, %v362_v46  ;;  %v443_v59 = vsel %vm303_vm1, %v438_v47, %v442_v48  ;;  %v370_v60 = vrot.slane %v368_v49, 1  ;;  %v366_v61 = vor.u32 %v364_v52, %v362_v46  ;;  %v5382_v46 = vld [vmem:[%s5157_s7 + $0x10] sm:$0xff]   ;;  %v5387_v49 = vld [vmem:[%s5157_s7 + $0x18] sm:$0xff]  }
  0x30   : > { %v378_v1 = vrot.slane %v376_v55, 1  ;;  %v446_v2 = vor.u32 %v444_v57, %v442_v48  ;;  %v450_v3 = vrot.slane %v448_v58, 1  ;;  %v380_v8 = vshrl.u32 %v5283_v40, 16  ;;  %v5400_v55 = vld [vmem:[%s5157_s7 + $0x30] sm:$0xff]  }
  0x31   : > { %v374_v0 = vor.u32 %v372_v54, %v370_v60  ;;  %v371_v4 = vsel %vm303_vm1, %v366_v61, %v370_v60  ;;  %v4051_v12 = vcombine.low %v904_v63, %v5161_v5  ;;  %v944_v17 = vrot.slane %v5271_v26, 1  ;;  %v5415_v61 = vld [vmem:[%s5157_s7 + $0x38] sm:$0xff]  }
  0x32   : > { %v451_v16 = vsel %vm303_vm1, %v446_v2, %v450_v3  ;;  %v382_v18 = vor.u32 %v380_v8, %v378_v1  ;;  %v946_v19 = vrot.slane %v4816_v43, 1  ;;  %v912_v21 = vrot.slane %v5167_v7, 1  ;;  %v2104_v43 = vld [vmem:[%s5157_s7 + $0x8] sm:$0xc]  ;;  %v5425_v2 = vld [vmem:[%s5157_s7 + $0x40] sm:$0xff]  }
  0x33   : > { %v379_v9 = vsel %vm303_vm1, %v374_v0, %v378_v1  ;;  %v911_v20 = vrot.slane %v4051_v12, 1  ;;  %v1442_v29 = vsel %vm507_vm0, %v5222_v45, 0  ;;  %v914_v30 = vrot.slane %v5181_v15, 1  ;;  %v5433_v8 = vld [vmem:[%s5157_s7 + $0x48] sm:$0xff]  }
  0x34   : > { %4432 = vmatmul.mubr.msk.bf16.gmra.mxu1 %vm452_vm2, %v435_v56  ;;  %v5316_v5 = vsel %vm910_vm3, %v944_v17, %v946_v19  ;;  %v387_v22 = vsel %vm303_vm1, %v382_v18, %v5192_v27  ;;  %v916_v27 = vrot.slane %v5195_v28, 1  ;;  %v1889_v31 = vsel %vm507_vm0, %v5202_v33, 0 }
  0x35   : > { %4412 = vmatmul.mubr.msk.bf16.gmra.mxu0 %vm452_vm2, %v355_v51  ;;  %4435 = vmatprep.mubr.msk.bf16.mxu1 %vm452_vm2, %v443_v59  ;;  %v913_v25 = vsel %vm910_vm3, %v911_v20, %v912_v21  ;;  %v915_v45 = vsel %vm910_vm3, %v912_v21, %v914_v30  ;;  %v920_v34 = vrot.slane %v5229_v50, 1  ;;  %v924_v36 = vrot.slane %v5266_v23, 1  ;;  %v5391_v51 = vld [vmem:[%s5157_s7 + $0x20] sm:$0xff]  }
  0x36   : > { %4415 = vmatprep.mubr.msk.bf16.mxu0 %vm452_vm2, %v363_v53  ;;  %v917_v32 = vsel %vm910_vm3, %v914_v30, %v916_v27  ;;  %v926_v42 = vrot.slane %v5280_v38, 1  ;;  %v2112_v53 = vrot.slane %v5382_v46, 2  ;;  %v2114_v54 = vrot.slane %v5387_v49, 2  ;;  %v5463_v30 = vld [vmem:[%s5157_s7 + $0x58] sm:$0xff]  }
  0x37   : > { %v2116_v57 = vrot.slane %v5391_v51, 2  ;;  %v930_v58 = vrot.slane %v5175_v13, 1  ;;  %v932_v59 = vrot.slane %v5178_v14, 1  ;;  %v2120_v1 = vrot.slane %v5400_v55, 2 }
  0x38   : > { %v927_v48 = vsel %vm910_vm3, %v924_v36, %v926_v42  ;;  %v5410_v60 = vsel %vm2110_vm4, %v2112_v53, %v2114_v54  ;;  %v2126_v18 = vrot.slane %v5433_v8, 2  ;;  %v934_v20 = vrot.slane %v5190_v24, 1 }
  0x39   : > { %v5418_v63 = vsel %vm2110_vm4, %v2114_v54, %v2116_v57 }
  0x3c   : > { %4436 = vmatmul.mubr.msk.bf16.gmra.mxu1 %vm452_vm2, %v451_v16  ;;  %v2124_v16 = vrot.slane %v5425_v2, 2 }
  0x3d   : > { %4416 = vmatmul.mubr.msk.bf16.gmra.mxu0 %vm452_vm2, %v371_v4  ;;  %4441 = vmatprep.mubr.msk.bf16.mxu1 %vm452_vm2, %v5164_v6  ;;  %v5329_v6 = vld [vmem:[%s6727_s1 + $0xa] sm:$0x3]  ;;  %v2122_v4 = vrot.slane %v5415_v61, 2 }
  0x3e   : > { %4419 = vmatprep.mubr.msk.bf16.mxu0 %vm452_vm2, %v379_v9  ;;  %v5451_v21 = vsel %vm2110_vm4, %v2124_v16, %v2126_v18 }
  0x3f   : > { %v5440_v12 = vsel %vm2110_vm4, %v2120_v1, %v2122_v4  ;;  %v5446_v19 = vsel %vm2110_vm4, %v2122_v4, %v2124_v16 }
  0x44   : > { %4442 = vmatmul.mubr.msk.bf16.vlgmr.msra.gmra.mxu1 %vm452_vm2, %v5167_v7  ;;  %v5345_v7 = vld [vmem:[%s6727_s1 + $0xc] sm:$0x3] }
  0x45   : > { %4420 = vmatmul.mubr.msk.bf16.gmra.mxu0 %vm452_vm2, %v387_v22  ;;  %4516 = vmatpush3.bf16.msra.mxu1 %v1442_v29  ;;  %v936_v22 = vrot.slane %v5208_v37, 1  ;;  %v935_v29 = vsel %vm910_vm3, %v932_v59, %v934_v20 }
  0x46   : > { %4479 = vmatprep.mubr.msk.bf16.mxu0 %vm452_vm2, %v913_v25  ;;  %4445 = vmatprep.mubr.msk.bf16.mxu1 %vm452_vm2, %v5181_v15  ;;  %v918_v15 = vrot.slane %v5212_v39, 1  ;;  %v5459_v25 = vld [vmem:[%s5157_s7 + $0x50] sm:$0xff]  }
  0x47   : > { %4751 = vmatprep.subr.msk.bf16.mxu1 %vm507_vm0, %v5329_v6 }
  0x48   : > { %v919_v33 = vsel %vm910_vm3, %v916_v27, %v918_v15  ;;  %v921_v35 = vsel %vm910_vm3, %v918_v15, %v920_v34  ;;  %v937_v27 = vsel %vm910_vm3, %v934_v20, %v936_v22  ;;  %v940_v15 = vrot.slane %v5244_v62, 1 }
  0x4c   : > { %4446 = vmatmul.mubr.msk.bf16.gmra.mxu1 %vm452_vm2, %v5195_v28  ;;  %v922_v28 = vrot.slane %v5254_v10, 1 }
  0x4d   : > { %4480 = vmatmul.mubr.msk.bf16.vlgmr.msra.gmra.mxu0 %vm452_vm2, %v915_v45  ;;  %4449 = vmatprep.mubr.msk.bf16.mxu1 %vm452_vm2, %v5212_v39  ;;  %v2128_v45 = vrot.slane %v5459_v25, 2 }
  0x4e   : > { %4554 = vmatpush3.bf16.msra.mxu0 %v1889_v31  ;;  %4483 = vmatprep.mubr.msk.bf16.mxu0 %vm452_vm2, %v917_v32  ;;  %v923_v39 = vsel %vm910_vm3, %v920_v34, %v922_v28  ;;  %v925_v41 = vsel %vm910_vm3, %v922_v28, %v924_v36  ;;  %v1218_v34 = vld [vmem:[%s5157_s7 + $0x8] sm:$0xe] }
  0x4f   : > { %4752 = vmatprep.subr.msk.bf16.mxu0 %vm507_vm0, %v5345_v7  ;;  %v5470_v31 = vsel %vm2110_vm4, %v2126_v18, %v2128_v45  ;;  %v5488_v28 = vld [vmem:[%s5157_s7 + $0x68] sm:$0xff]  }
  0x54   : > { %4450 = vmatmul.mubr.msk.bf16.gmra.mxu1 %vm452_vm2, %v5229_v50  ;;  %v928_v50 = vrot.slane %v5283_v40, 1 }
  0x55   : > { %4484 = vmatmul.mubr.msk.bf16.gmra.mxu0 %vm452_vm2, %v919_v33  ;;  %4453 = vmatprep.mubr.msk.bf16.mxu1 %vm452_vm2, %v5254_v10  ;;  %v5379_v10 = vld [vmem:[%s5157_s7 + $0xc] sm:$0xf]  ;;  %v5484_v33 = vld [vmem:[%s5157_s7 + $0x60] sm:$0xff]  }
  0x56   : > { %4487 = vmatprep.mubr.msk.bf16.mxu0 %vm452_vm2, %v921_v35  ;;  %v4129_v47 = vcombine.low %v2104_v43, %v5379_v10 }
  0x58   : > { %v2111_v52 = vrot.slane %v4129_v47, 2  ;;  %v1673_v47 = vshrl.u32 %v5382_v46, 16 }
  0x5a   : > { %v5403_v56 = vsel %vm2110_vm4, %v2111_v52, %v2112_v53  ;;  %v1351_v52 = vrot.slane %v5382_v46, 1  ;;  %v5511_v53 = vld [vmem:[%s5157_s7 + $0x70] sm:$0xff]  }
  0x5b   : > { %v2136_v4 = vrot.slane %v5511_v53, 2 }
  0x5c   : > { %4454 = vmatmul.mubr.msk.bf16.gmra.mxu1 %vm452_vm2, %v5266_v23  ;;  %v929_v23 = vsel %vm910_vm3, %v926_v42, %v928_v50  ;;  %v942_v42 = vrot.slane %v5257_v11, 1 }
  0x5d   : > { %4488 = vmatmul.mubr.msk.bf16.gmra.mxu0 %vm452_vm2, %v923_v39  ;;  %4457 = vmatprep.mubr.msk.bf16.mxu1 %vm452_vm2, %v5280_v38  ;;  %v5395_v38 = vld [vmem:[%s5157_s7 + $0x28] sm:$0xff]   ;;  %v2132_v39 = vrot.slane %v5484_v33, 2 }
  0x5e   : > { %4491 = vmatprep.mubr.msk.bf16.mxu0 %vm452_vm2, %v925_v41  ;;  %v2118_v0 = vrot.slane %v5395_v38, 2  ;;  %v4071_v41 = vcombine.low %v1218_v34, %v5379_v10  ;;  %v943_v54 = vsel %vm910_vm3, %v940_v15, %v942_v42  ;;  %v5544_v34 = vld [vmem:[%s5157_s7 + $0x88] sm:$0xff]  }
  0x60   : > { %v5428_v3 = vsel %vm2110_vm4, %v2116_v57, %v2118_v0  ;;  %v5436_v9 = vsel %vm2110_vm4, %v2118_v0, %v2120_v1  ;;  %v1665_v43 = vshrl.u32 %v4071_v41, 16  ;;  %v1668_v10 = vshll.u32 %v4071_v41, 16 }
  0x61   : > { %v945_v57 = vsel %vm910_vm3, %v942_v42, %v944_v17  ;;  %v1675_v0 = vrot.slane %v1673_v47, 1  ;;  %v1682_v17 = vshrl.u32 %v5387_v49, 16  ;;  %v1703_v47 = vshll.u32 %v5395_v38, 16 }
  0x64   : > { %4458 = vmatmul.mubr.msk.bf16.gmra.mxu1 %vm452_vm2, %v5283_v40  ;;  %v931_v40 = vsel %vm910_vm3, %v928_v50, %v930_v58 }
  0x65   : > { %4492 = vmatmul.mubr.msk.bf16.gmra.mxu0 %vm452_vm2, %v927_v48  ;;  %4461 = vmatprep.mubr.msk.bf16.mxu1 %vm452_vm2, %v5175_v13  ;;  %v933_v13 = vsel %vm910_vm3, %v930_v58, %v932_v59  ;;  %v1676_v48 = vshll.u32 %v5382_v46, 16  ;;  %v5518_v58 = vld [vmem:[%s5157_s7 + $0x78] sm:$0xff]   ;;  %v1670_v59 = vrot.slane %v1668_v10, 2  ;;  %v1700_v10 = vshrl.u32 %v5395_v38, 16 }
  0x66   : > { %4495 = vmatprep.mubr.msk.bf16.mxu0 %vm452_vm2, %v929_v23  ;;  %v1350_v23 = vrot.slane %v4071_v41, 1 }
  0x67   : > { %v1678_v1 = vrot.slane %v1676_v48, 2 }
  0x68   : > { %v1352_v46 = vsel %vm910_vm3, %v1350_v23, %v1351_v52  ;;  %v1709_v23 = vshrl.u32 %v5400_v55, 16 }
  0x69   : > { %v1679_v20 = vor.u32 %v1678_v1, %v1675_v0  ;;  %v2642_v0 = vsel %vm507_vm0, %v5345_v7, 0  ;;  %v1702_v1 = vrot.slane %v1700_v10, 1 }
  0x6c   : > { %4462 = vmatmul.mubr.msk.bf16.gmra.mxu1 %vm452_vm2, %v5178_v14  ;;  %v2130_v14 = vrot.slane %v5463_v30, 2 }
  0x6d   : > { %4496 = vmatmul.mubr.msk.bf16.gmra.mxu0 %vm452_vm2, %v931_v40  ;;  %4465 = vmatprep.mubr.msk.bf16.mxu1 %vm452_vm2, %v5190_v24  ;;  %v938_v24 = vrot.slane %v5217_v44, 1 }
  0x6e   : > { %4499 = vmatprep.mubr.msk.bf16.mxu0 %vm452_vm2, %v933_v13  ;;  %v5475_v32 = vsel %vm2110_vm4, %v2128_v45, %v2130_v14  ;;  %v1685_v13 = vshll.u32 %v5387_v49, 16  ;;  %v1355_v45 = vrot.slane %v5391_v51, 1 }
  0x6f   : > { %v939_v35 = vsel %vm910_vm3, %v936_v22, %v938_v24  ;;  %v941_v36 = vsel %vm910_vm3, %v938_v24, %v940_v15  ;;  %v1691_v22 = vshrl.u32 %v5391_v51, 16  ;;  %v1684_v24 = vrot.slane %v1682_v17, 1 }
  0x70   : > { %v1687_v15 = vrot.slane %v1685_v13, 2  ;;  %v1711_v17 = vrot.slane %v1709_v23, 1 }
  0x74   : > { %4466 = vmatmul.mubr.msk.bf16.gmra.mxu1 %vm452_vm2, %v5208_v37  ;;  %v2134_v37 = vrot.slane %v5488_v28, 2 }
  0x75   : > { %4500 = vmatmul.mubr.msk.bf16.gmra.mxu0 %vm452_vm2, %v935_v29  ;;  %4469 = vmatprep.mubr.msk.bf16.mxu1 %vm452_vm2, %v5217_v44  ;;  %v5496_v44 = vsel %vm2110_vm4, %v2130_v14, %v2132_v39  ;;  %v1694_v29 = vshll.u32 %v5391_v51, 16  ;;  %v5541_v14 = vld [vmem:[%s5157_s7 + $0x80] sm:$0xff]  }
  0x76   : > { %4503 = vmatprep.mubr.msk.bf16.mxu0 %vm452_vm2, %v937_v27  ;;  %v5501_v50 = vsel %vm2110_vm4, %v2132_v39, %v2134_v37  ;;  %v5525_v40 = vsel %vm2110_vm4, %v2134_v37, %v2136_v4  ;;  %v1353_v27 = vrot.slane %v5387_v49, 1  ;;  %v2140_v39 = vrot.slane %v5541_v14, 2 }
  0x77   : > { %v2142_v37 = vrot.slane %v5544_v34, 2  ;;  %v2203_v49 = vsel %vm507_vm0, %v5329_v6, 0 }
  0x78   : > { %v1354_v41 = vsel %vm910_vm3, %v1351_v52, %v1353_v27  ;;  %v1356_v51 = vsel %vm910_vm3, %v1353_v27, %v1355_v45  ;;  %v1712_v52 = vshll.u32 %v5400_v55, 16  ;;  %v1718_v27 = vshrl.u32 %v5415_v61, 16 }
  0x79   : > { %v5567_v6 = vsel %vm2110_vm4, %v2140_v39, %v2142_v37 }
  0x7c   : > { %4470 = vmatmul.mubr.msk.bf16.gmra.mxu1 %vm452_vm2, %v5244_v62  ;;  %v1667_v62 = vrot.slane %v1665_v43, 1  ;;  %v1688_v43 = vor.u32 %v1687_v15, %v1684_v24 }
  0x7d   : > { %4504 = vmatmul.mubr.msk.bf16.gmra.mxu0 %vm452_vm2, %v939_v35  ;;  %4473 = vmatprep.mubr.msk.bf16.mxu1 %vm452_vm2, %v5257_v11  ;;  %v2138_v11 = vrot.slane %v5518_v58, 2  ;;  %v1693_v35 = vrot.slane %v1691_v22, 1 }
  0x7e   : > { %4507 = vmatprep.mubr.msk.bf16.mxu0 %vm452_vm2, %v941_v36  ;;  %v1671_v18 = vor.u32 %v1670_v59, %v1667_v62  ;;  %v1696_v36 = vrot.slane %v1694_v29, 2  ;;  %v5576_v62 = vld [vmem:[%s5157_s7 + $0x90] sm:$0xff]   ;;  %v1689_v59 = vsel %vm1663_vm5, %v1679_v20, %v1688_v43 }
  0x7f   : > { %v5531_v16 = vsel %vm2110_vm4, %v2136_v4, %v2138_v11  ;;  %v5556_v42 = vsel %vm2110_vm4, %v2138_v11, %v2140_v39  ;;  %v1705_v4 = vrot.slane %v1703_v47, 2  ;;  %v5584_v11 = vld [vmem:[%s5157_s7 + $0x98] ss:$0 sps:$4 sm:$0x33]   ;;  %v1363_v39 = vrot.slane %v5425_v2, 1 }
  0x80   : > { %v1697_v48 = vor.u32 %v1696_v36, %v1693_v35  ;;  %v1730_v35 = vshll.u32 %v5425_v2, 16  ;;  %v1361_v36 = vrot.slane %v5415_v61, 1 }
  0x81   : > { %v1706_v29 = vor.u32 %v1705_v4, %v1702_v1  ;;  %v5629_v1 = vld [vmem:[%s5157_s7 + $0x14] sm:$0xf]  ;;  %v3304_v4 = vld [vmem:[%s5157_s7 + $0x10] sm:$0x8] }
  0x82   : > { %v1732_v10 = vrot.slane %v1730_v35, 2  ;;  %v1364_v23 = vsel %vm910_vm3, %v1361_v36, %v1363_v39 }
  0x84   : > { %4474 = vmatmul.mubr.msk.bf16.gmra.mxu1 %vm452_vm2, %v5271_v26  ;;  %v1680_v26 = vsel %vm1663_vm5, %v1671_v18, %v1679_v20  ;;  %v5592_v18 = vld [vmem:[%s6727_s1 + $0x10] sm:$0x3]  ;;  %v2146_v20 = vrot.slane %v5584_v11, 2 }
  0x85   : > { %4508 = vmatmul.mubr.msk.bf16.gmra.mxu0 %vm452_vm2, %v943_v54  ;;  %4517 = vmatprep.mubr.msk.bf16.mxu1 %vm452_vm2, %v1352_v46  ;;  %v1357_v54 = vrot.slane %v5395_v38, 1  ;;  %v1698_v46 = vsel %vm1663_vm5, %v1688_v43, %v1697_v48  ;;  %v1714_v38 = vrot.slane %v1712_v52, 2 }
  0x86   : > { %4511 = vmatprep.mubr.msk.bf16.mxu0 %vm452_vm2, %v945_v57  ;;  %v1359_v57 = vrot.slane %v5400_v55, 1  ;;  %v2144_v55 = vrot.slane %v5576_v62, 2 }
  0x87   : > { %v1358_v13 = vsel %vm910_vm3, %v1355_v45, %v1357_v54  ;;  %v1721_v45 = vshll.u32 %v5415_v61, 16  ;;  %v1715_v15 = vor.u32 %v1714_v38, %v1711_v17 }
  0x88   : > { %v1360_v7 = vsel %vm910_vm3, %v1357_v54, %v1359_v57  ;;  %v5598_v22 = vsel %vm2110_vm4, %v2142_v37, %v2144_v55  ;;  %v5604_v24 = vsel %vm2110_vm4, %v2144_v55, %v2146_v20  ;;  %v1720_v37 = vrot.slane %v1718_v27, 1  ;;  %v5634_v55 = vld [vmem:[%s5157_s7 + $0x18] sm:$0xff]   ;;  %v5639_v27 = vld [vmem:[%s5157_s7 + $0x20] sm:$0xff]  }
  0x89   : > { %v1362_v47 = vsel %vm910_vm3, %v1359_v57, %v1361_v36  ;;  %v1745_v54 = vshrl.u32 %v5459_v25, 16  ;;  %v1748_v57 = vshll.u32 %v5459_v25, 16  ;;  %v1754_v36 = vshrl.u32 %v5463_v30, 16 }
  0x8c   : > { %4518 = vmatmul.mubr.msk.bf16.vlgmr.msra.gmra.mxu1 %vm452_vm2, %v1354_v41  ;;  %v1707_v41 = vsel %vm1663_vm5, %v1697_v48, %v1706_v29  ;;  %v1739_v48 = vshll.u32 %v5433_v8, 16 }
  0x8d   : > { %4512 = vmatmul.mubr.msk.bf16.gmra.mxu0 %vm452_vm2, %v5316_v5  ;;  %v5564_v5 = vld [vmem:[%s6727_s1 + $0xe] sm:$0x3]  ;;  %4592 = vmatpush3.bf16.msra.mxu1 %v2203_v49  ;;  %v1723_v49 = vrot.slane %v1721_v45, 2  ;;  %v3312_v45 = vrot.slane %v5634_v55, 3 }
  0x8e   : > { %4555 = vmatprep.mubr.msk.bf16.mxu0 %vm452_vm2, %v1680_v26  ;;  %4521 = vmatprep.mubr.msk.bf16.mxu1 %vm452_vm2, %v1356_v51  ;;  %v1727_v26 = vshrl.u32 %v5425_v2, 16  ;;  %v1716_v51 = vsel %vm1663_vm5, %v1706_v29, %v1715_v15  ;;  %v1736_v2 = vshrl.u32 %v5433_v8, 16  ;;  %v1741_v38 = vrot.slane %v1739_v48, 2 }
  0x8f   : > { %4753 = vmatprep.subr.msk.bf16.mxu1 %vm507_vm0, %v5564_v5  ;;  %v1724_v61 = vor.u32 %v1723_v49, %v1720_v37  ;;  %v1750_v29 = vrot.slane %v1748_v57, 2  ;;  %v1763_v49 = vshrl.u32 %v5484_v33, 16 }
  0x90   : > { %v1729_v43 = vrot.slane %v1727_v26, 1  ;;  %v1738_v17 = vrot.slane %v1736_v2, 1  ;;  %v6730_v26 = vrot.slane %v5639_v27, 3 }
  0x92   : > { %v1733_v52 = vor.u32 %v1732_v10, %v1729_v43  ;;  %v1742_v35 = vor.u32 %v1741_v38, %v1738_v17  ;;  %v5658_v43 = vsel %vm3310_vm6, %v3312_v45, %v6730_v26  ;;  %v1369_v10 = vrot.slane %v5463_v30, 1 }
  0x93   : > { %v1781_v17 = vshrl.u32 %v5511_v53, 16  ;;  %v1784_v38 = vshll.u32 %v5511_v53, 16 }
  0x94   : > { %4522 = vmatmul.mubr.msk.bf16.gmra.mxu1 %vm452_vm2, %v1358_v13  ;;  %v4207_v13 = vcombine.low %v3304_v4, %v5629_v1  ;;  %v1734_v20 = vsel %vm1663_vm5, %v1724_v61, %v1733_v52 }
  0x95   : > { %4556 = vmatmul.mubr.msk.bf16.vlgmr.msra.gmra.mxu0 %vm452_vm2, %v1689_v59  ;;  %4525 = vmatprep.mubr.msk.bf16.mxu1 %vm452_vm2, %v1360_v7  ;;  %v1365_v59 = vrot.slane %v5433_v8, 1  ;;  %v1747_v7 = vrot.slane %v1745_v54, 1  ;;  %v1765_v54 = vrot.slane %v1763_v49, 1  ;;  %v1802_v49 = vshll.u32 %v5541_v14, 16 }
  0x96   : > { %4630 = vmatpush3.bf16.msra.mxu0 %v2642_v0  ;;  %4559 = vmatprep.mubr.msk.bf16.mxu0 %vm452_vm2, %v1698_v46  ;;  %v1367_v0 = vrot.slane %v5459_v25, 1  ;;  %v1725_v46 = vsel %vm1663_vm5, %v1715_v15, %v1724_v61  ;;  %v3311_v25 = vrot.slane %v4207_v13, 3  ;;  %v1756_v61 = vrot.slane %v1754_v36, 1 }
  0x97   : > { %4754 = vmatprep.subr.msk.bf16.mxu0 %vm507_vm0, %v5592_v18  ;;  %v1366_v8 = vsel %vm910_vm3, %v1363_v39, %v1365_v59  ;;  %v1751_v39 = vor.u32 %v1750_v29, %v1747_v7  ;;  %v1375_v13 = vrot.slane %v5511_v53, 1  ;;  %v1793_v53 = vshll.u32 %v5518_v58, 16 }
  0x98   : > { %v1368_v15 = vsel %vm910_vm3, %v1365_v59, %v1367_v0  ;;  %v5650_v37 = vsel %vm3310_vm6, %v3311_v25, %v3312_v45  ;;  %v1370_v59 = vsel %vm910_vm3, %v1367_v0, %v1369_v10  ;;  %v1373_v0 = vrot.slane %v5488_v28, 1 }
  0x99   : > { %v1752_v48 = vsel %vm1663_vm5, %v1742_v35, %v1751_v39  ;;  %v1783_v25 = vrot.slane %v1781_v17, 1  ;;  %v1786_v45 = vrot.slane %v1784_v38, 2  ;;  %v1383_v17 = vrot.slane %v5576_v62, 1 }
  0x9c   : > { %4526 = vmatmul.mubr.msk.bf16.gmra.mxu1 %vm452_vm2, %v1362_v47  ;;  %v1371_v47 = vrot.slane %v5484_v33, 1 }
  0x9d   : > { %4560 = vmatmul.mubr.msk.bf16.gmra.mxu0 %vm452_vm2, %v1707_v41  ;;  %4529 = vmatprep.mubr.msk.bf16.mxu1 %vm452_vm2, %v1364_v23  ;;  %v1757_v41 = vshll.u32 %v5463_v30, 16  ;;  %v1743_v23 = vsel %vm1663_vm5, %v1733_v52, %v1742_v35  ;;  %v1772_v30 = vshrl.u32 %v5488_v28, 16  ;;  %v1376_v35 = vsel %vm910_vm3, %v1373_v0, %v1375_v13 }
  0x9e   : > { %4563 = vmatprep.mubr.msk.bf16.mxu0 %vm452_vm2, %v1716_v51  ;;  %v1766_v51 = vshll.u32 %v5484_v33, 16  ;;  %v1372_v4 = vsel %vm910_vm3, %v1369_v10, %v1371_v47  ;;  %v1775_v33 = vshll.u32 %v5488_v28, 16  ;;  %v1790_v28 = vshrl.u32 %v5518_v58, 16 }
  0x9f   : > { %v1759_v2 = vrot.slane %v1757_v41, 2  ;;  %v1774_v7 = vrot.slane %v1772_v30, 1  ;;  %v1787_v41 = vor.u32 %v1786_v45, %v1783_v25  ;;  %v1379_v10 = vrot.slane %v5541_v14, 1  ;;  %v4837_v25 = vld [vmem:[%s5157_s7 + $0x98] ss:$0 sps:$4 sm:$0x11]  }
  0xa0   : > { %v1768_v57 = vrot.slane %v1766_v51, 2  ;;  %v1777_v29 = vrot.slane %v1775_v33, 2  ;;  %v1377_v51 = vrot.slane %v5518_v58, 1  ;;  %v1808_v58 = vshrl.u32 %v5544_v34, 16 }
  0xa1   : > { %v1817_v30 = vshrl.u32 %v5576_v62, 16  ;;  %v1820_v33 = vshll.u32 %v5576_v62, 16  ;;  %v1826_v62 = vshrl.u32 %v5584_v11, 16 }
  0xa2   : > { %v1769_v52 = vor.u32 %v1768_v57, %v1765_v54  ;;  %v1778_v36 = vor.u32 %v1777_v29, %v1774_v7  ;;  %v1804_v54 = vrot.slane %v1802_v49, 2  ;;  %v1378_v57 = vsel %vm910_vm3, %v1375_v13, %v1377_v51 }
  0xa3   : > { %v1819_v7 = vrot.slane %v1817_v30, 1  ;;  %v1822_v29 = vrot.slane %v1820_v33, 2  ;;  %v5769_v30 = vld [vmem:[%s5157_s7 + $0x48] sm:$0xff]  }
  0xa4   : > { %4530 = vmatmul.mubr.msk.bf16.gmra.mxu1 %vm452_vm2, %v1366_v8 }
  0xa5   : > { %4564 = vmatmul.mubr.msk.bf16.gmra.mxu0 %vm452_vm2, %v1725_v46  ;;  %4533 = vmatprep.mubr.msk.bf16.mxu1 %vm452_vm2, %v1368_v15  ;;  %v1760_v46 = vor.u32 %v1759_v2, %v1756_v61  ;;  %v1374_v15 = vsel %vm910_vm3, %v1371_v47, %v1373_v0  ;;  %v1779_v47 = vsel %vm1663_vm5, %v1769_v52, %v1778_v36  ;;  %v1795_v61 = vrot.slane %v1793_v53, 2 }
  0xa6   : > { %4567 = vmatprep.mubr.msk.bf16.mxu0 %vm452_vm2, %v1734_v20  ;;  %v1788_v2 = vsel %vm1663_vm5, %v1778_v36, %v1787_v41  ;;  %v1810_v0 = vrot.slane %v1808_v58, 1  ;;  %v1385_v36 = vrot.slane %v4837_v25, 1  ;;  %v5753_v58 = vld [vmem:[%s5157_s7 + $0x38] sm:$0xff]  }
  0xa7   : > { %v1761_v20 = vsel %vm1663_vm5, %v1751_v39, %v1760_v46  ;;  %v1770_v8 = vsel %vm1663_vm5, %v1760_v46, %v1769_v52  ;;  %v1799_v39 = vshrl.u32 %v5541_v14, 16  ;;  %v1811_v14 = vshll.u32 %v5544_v34, 16 }
  0xa8   : > { %v1381_v52 = vrot.slane %v5544_v34, 1 }
  0xa9   : > { %v1813_v13 = vrot.slane %v1811_v14, 2  ;;  %v5765_v14 = vld [vmem:[%s5157_s7 + $0x40] sm:$0xff]  }
  0xaa   : > { %v1384_v45 = vsel %vm910_vm3, %v1381_v52, %v1383_v17 }
  0xab   : > { %v1814_v34 = vor.u32 %v1813_v13, %v1810_v0 }
  0xac   : > { %4534 = vmatmul.mubr.msk.bf16.gmra.mxu1 %vm452_vm2, %v1370_v59  ;;  %v1380_v59 = vsel %vm910_vm3, %v1377_v51, %v1379_v10 }
  0xad   : > { %4568 = vmatmul.mubr.msk.bf16.gmra.mxu0 %vm452_vm2, %v1743_v23  ;;  %4537 = vmatprep.mubr.msk.bf16.mxu1 %vm452_vm2, %v1372_v4  ;;  %v1792_v23 = vrot.slane %v1790_v28, 1  ;;  %v2418_v28 = vld [vmem:[%s5157_s7 + $0x10] sm:$0xc] }
  0xae   : > { %4571 = vmatprep.mubr.msk.bf16.mxu0 %vm452_vm2, %v1752_v48  ;;  %v1801_v48 = vrot.slane %v1799_v39, 1  ;;  %v5720_v51 = vcombine.low %v2418_v28, %v5629_v1 }
  0xaf   : > { %v1796_v4 = vor.u32 %v1795_v61, %v1792_v23  ;;  %v2551_v23 = vrot.slane %v5634_v55, 2 }
  0xb0   : > { %v1805_v46 = vor.u32 %v1804_v54, %v1801_v48  ;;  %v3089_v48 = vsel %vm507_vm0, %v5564_v5, 0  ;;  %v2553_v54 = vrot.slane %v5639_v27, 2  ;;  %v3403_v5 = vsel %vm507_vm0, %v5592_v18, 0 }
  0xb1   : > { %v1797_v38 = vsel %vm1663_vm5, %v1787_v41, %v1796_v4  ;;  %v1828_v41 = vrot.slane %v1826_v62, 1 }
  0xb2   : > { %v1815_v53 = vsel %vm1663_vm5, %v1805_v46, %v1814_v34 }
  0xb4   : > { %4538 = vmatmul.mubr.msk.bf16.gmra.mxu1 %vm452_vm2, %v1374_v15  ;;  %v1829_v15 = vshll.u32 %v5584_v11, 16 }
  0xb5   : > { %4572 = vmatmul.mubr.msk.bf16.gmra.mxu0 %vm452_vm2, %v1761_v20  ;;  %4541 = vmatprep.mubr.msk.bf16.mxu1 %vm452_vm2, %v1376_v35  ;;  %v1806_v20 = vsel %vm1663_vm5, %v1796_v4, %v1805_v46  ;;  %v1823_v35 = vor.u32 %v1822_v29, %v1819_v7 }
  0xb6   : > { %4575 = vmatprep.mubr.msk.bf16.mxu0 %vm452_vm2, %v1770_v8  ;;  %v1382_v8 = vsel %vm910_vm3, %v1379_v10, %v1381_v52  ;;  %v1831_v39 = vrot.slane %v1829_v15, 2  ;;  %v1386_v10 = vsel %vm910_vm3, %v1383_v17, %v1385_v36  ;;  %v2563_v17 = vrot.slane %v5769_v30, 2 }
  0xb7   : > { %v1824_v49 = vsel %vm1663_vm5, %v1814_v34, %v1823_v35 }
  0xb8   : > { %v1832_v11 = vor.u32 %v1831_v39, %v1828_v41 }
  0xba   : > { %v1833_v1 = vsel %vm1663_vm5, %v1823_v35, %v1832_v11 }
  0xbc   : > { %4542 = vmatmul.mubr.msk.bf16.gmra.mxu1 %vm452_vm2, %v1378_v57  ;;  %v2554_v57 = vsel %vm2110_vm4, %v2551_v23, %v2553_v54 }
  0xbd   : > { %4576 = vmatmul.mubr.msk.bf16.gmra.mxu0 %vm452_vm2, %v1779_v47  ;;  %4545 = vmatprep.mubr.msk.bf16.mxu1 %vm452_vm2, %v1380_v59  ;;  %v2550_v47 = vrot.slane %v5720_v51, 2  ;;  %v5747_v59 = vld [vmem:[%s5157_s7 + $0x30] sm:$0xff]  }
  0xbe   : > { %4579 = vmatprep.mubr.msk.bf16.mxu0 %vm452_vm2, %v1788_v2  ;;  %v5733_v2 = vld [vmem:[%s5157_s7 + $0x28] sm:$0xff]  }
  0xbf   : > { %v2552_v61 = vsel %vm2110_vm4, %v2550_v47, %v2551_v23 }
  0xc4   : > { %4546 = vmatmul.mubr.msk.bf16.gmra.mxu1 %vm452_vm2, %v1382_v8  ;;  %v5799_v8 = vld [vmem:[%s5157_s7 + $0x58] sm:$0xff]  }
  0xc5   : > { %4580 = vmatmul.mubr.msk.bf16.gmra.mxu0 %vm452_vm2, %v1797_v38  ;;  %4549 = vmatprep.mubr.msk.bf16.mxu1 %vm452_vm2, %v1384_v45  ;;  %v2567_v15 = vrot.slane %v5799_v8, 2 }
  0xc6   : > { %4583 = vmatprep.mubr.msk.bf16.mxu0 %vm452_vm2, %v1806_v20  ;;  %v5791_v20 = vld [vmem:[%s5157_s7 + $0x50] sm:$0xff]  }
  0xc7   : > { %v2565_v45 = vrot.slane %v5791_v20, 2 }
  0xc9   : > { %v2566_v28 = vsel %vm2110_vm4, %v2563_v17, %v2565_v45 }
  0xcc   : > { %4550 = vmatmul.mubr.msk.bf16.gmra.mxu1 %vm452_vm2, %v1386_v10 }
  0xcd   : > { %4584 = vmatmul.mubr.msk.bf16.gmra.mxu0 %vm452_vm2, %v1815_v53  ;;  %4593 = vmatprep.mubr.msk.bf16.mxu1 %vm452_vm2, %v5403_v56  ;;  %v2555_v56 = vrot.slane %v5733_v2, 2  ;;  %v5823_v53 = vld [vmem:[%s5157_s7 + $0x60] sm:$0xff]  }
  0xce   : > { %4587 = vmatprep.mubr.msk.bf16.mxu0 %vm452_vm2, %v1824_v49  ;;  %v5831_v49 = vld [vmem:[%s5157_s7 + $0x68] sm:$0xff]   ;;  %v2569_v11 = vrot.slane %v5823_v53, 2 }
  0xcf   : > { %v2556_v4 = vsel %vm2110_vm4, %v2553_v54, %v2555_v56 }
  0xd0   : > { %v2570_v54 = vsel %vm2110_vm4, %v2567_v15, %v2569_v11 }
  0xd4   : > { %4594 = vmatmul.mubr.msk.bf16.vlgmr.msra.gmra.mxu1 %vm452_vm2, %v5410_v60  ;;  %v2557_v60 = vrot.slane %v5747_v59, 2 }
  0xd5   : > { %4588 = vmatmul.mubr.msk.bf16.gmra.mxu0 %vm452_vm2, %v1833_v1  ;;  %4668 = vmatpush3.bf16.msra.mxu1 %v3089_v48  ;;  %v2571_v1 = vrot.slane %v5831_v49, 2 }
  0xd6   : > { %4631 = vmatprep.mubr.msk.bf16.mxu0 %vm452_vm2, %v2552_v61  ;;  %4597 = vmatprep.mubr.msk.bf16.mxu1 %vm452_vm2, %v5418_v63  ;;  %v2559_v63 = vrot.slane %v5753_v58, 2  ;;  %v2558_v18 = vsel %vm2110_vm4, %v2555_v56, %v2557_v60  ;;  %v5855_v56 = vld [vmem:[%s5157_s7 + $0x70] sm:$0xff]  }
  0xd8   : > { %v2560_v46 = vsel %vm2110_vm4, %v2557_v60, %v2559_v63 }
  0xdc   : > { %4598 = vmatmul.mubr.msk.bf16.gmra.mxu1 %vm452_vm2, %v5428_v3  ;;  %v2561_v3 = vrot.slane %v5765_v14, 2 }
  0xdd   : > { %4632 = vmatmul.mubr.msk.bf16.vlgmr.msra.gmra.mxu0 %vm452_vm2, %v2554_v57  ;;  %4601 = vmatprep.mubr.msk.bf16.mxu1 %vm452_vm2, %v5436_v9 }
  0xde   : > { %4706 = vmatpush3.bf16.msra.mxu0 %v3403_v5  ;;  %4635 = vmatprep.mubr.msk.bf16.mxu0 %vm452_vm2, %v2556_v4  ;;  %v2562_v13 = vsel %vm2110_vm4, %v2559_v63, %v2561_v3  ;;  %v5863_v4 = vld [vmem:[%s5157_s7 + $0x78] sm:$0xff]   ;;  %v2573_v63 = vrot.slane %v5855_v56, 2 }
  0xe4   : > { %v5776_v52 = vpop.f32.mrf.mxu1  ;;  %4602 = vmatmul.mubr.msk.bf16.gmra.mxu1 %vm452_vm2, %v5440_v12  ;;  %v2564_v12 = vsel %vm2110_vm4, %v2561_v3, %v2563_v17  ;;  %v2575_v3 = vrot.slane %v5863_v4, 2 }
  0xe5   : > { %v5771_v33 = vpop.f32.mrf.mxu0  ;;  %4636 = vmatmul.mubr.msk.bf16.gmra.mxu0 %vm452_vm2, %v2558_v18  ;;  %4605 = vmatprep.mubr.msk.bf16.mxu1 %vm452_vm2, %v5446_v19 }
  0xe6   : > { %4639 = vmatprep.mubr.msk.bf16.mxu0 %vm452_vm2, %v2560_v46  ;;  %v5785_v38 = vpop.f32.mrf.mxu1 }
  0xe7   : > { %v5780_v9 = vpop.f32.mrf.mxu0 }
  0xe8   : > { %v5793_v7 = vpop.f32.mrf.mxu1 }
  0xe9   : > { %v5787_v0 = vpop.f32.mrf.mxu0 }
  0xea   : > { %v5801_v25 = vpop.f32.mrf.mxu1 }
  0xeb   : > { %v5795_v29 = vpop.f32.mrf.mxu0 }
  0xec   : > { %v5808_v34 = vpop.f32.mrf.mxu1  ;;  %4606 = vmatmul.mubr.msk.bf16.gmra.mxu1 %vm452_vm2, %v5451_v21  ;;  %v2568_v21 = vsel %vm2110_vm4, %v2565_v45, %v2567_v15  ;;  %v5887_v45 = vld [vmem:[%s5157_s7 + $0x80] sm:$0xff]  }
  0xed   : > { %v5803_v19 = vpop.f32.mrf.mxu0  ;;  %4640 = vmatmul.mubr.msk.bf16.gmra.mxu0 %vm452_vm2, %v2562_v13  ;;  %4609 = vmatprep.mubr.msk.bf16.mxu1 %vm452_vm2, %v5470_v31  ;;  %6747 = vst [vmem:[#allocation13_spill] sm:$0xff] %v5887_v45 }
  0xee   : > { %4643 = vmatprep.mubr.msk.bf16.mxu0 %vm452_vm2, %v2564_v12  ;;  %v5817_v35 = vpop.f32.mrf.mxu1  ;;  %v2574_v12 = vsel %vm2110_vm4, %v2571_v1, %v2573_v63 }
  0xef   : > { %v5812_v62 = vpop.f32.mrf.mxu0 }
  0xf0   : > { %v5825_v41 = vpop.f32.mrf.mxu1 }
  0xf1   : > { %v5819_v36 = vpop.f32.mrf.mxu0  ;;  %6739 = vst [vmem:[#allocation5_spill] sm:$0xff] %v5825_v41 }
  0xf2   : > { %v5833_v10 = vpop.f32.mrf.mxu1 }
  0xf3   : > { %v5827_v39 = vpop.f32.mrf.mxu0  ;;  %6740 = vst [vmem:[#allocation6_spill] sm:$0xff] %v5833_v10 }
  0xf4   : > { %v5840_v47 = vpop.f32.mrf.mxu1  ;;  %4610 = vmatmul.mubr.msk.bf16.gmra.mxu1 %vm452_vm2, %v5475_v32  ;;  %v2572_v32 = vsel %vm2110_vm4, %v2569_v11, %v2571_v1 }
  0xf5   : > { %v5835_v31 = vpop.f32.mrf.mxu0  ;;  %4644 = vmatmul.mubr.msk.bf16.gmra.mxu0 %vm452_vm2, %v2566_v28  ;;  %6741 = vst [vmem:[#allocation7_spill] sm:$0xff] %v5840_v47  ;;  %4613 = vmatprep.mubr.msk.bf16.mxu1 %vm452_vm2, %v5496_v44 }
  0xf6   : > { %4647 = vmatprep.mubr.msk.bf16.mxu0 %vm452_vm2, %v2568_v21  ;;  %v5849_v61 = vpop.f32.mrf.mxu1  ;;  %v5895_v21 = vld [vmem:[%s5157_s7 + $0x88] sm:$0xff]  }
  0xf7   : > { %v5844_v23 = vpop.f32.mrf.mxu0  ;;  %6742 = vst [vmem:[#allocation8_spill] sm:$0xff] %v5849_v61  ;;  %6749 = vst [vmem:[#allocation15_spill] sm:$0xff] %v5895_v21  ;;  %v5927_v61 = vld [vmem:[%s5157_s7 + $0x98] sm:$0xff]  }
  0xf8   : > { %v5857_v57 = vpop.f32.mrf.mxu1  ;;  %6751 = vst [vmem:[#allocation17_spill] sm:$0xff] %v5927_v61 }
  0xf9   : > { %v5851_v48 = vpop.f32.mrf.mxu0  ;;  %6743 = vst [vmem:[#allocation9_spill] sm:$0xff] %v5857_v57  ;;  %v5921_v57 = vld [vmem:[%s5157_s7 + $0x90] sm:$0xff]  }
  0xfa   : > { %v5865_v60 = vpop.f32.mrf.mxu1 }
  0xfb   : > { %v5859_v5 = vpop.f32.mrf.mxu0  ;;  %6744 = vst [vmem:[#allocation10_spill] sm:$0xff] %v5865_v60 }
  0xfc   : > { %v5872_v18 = vpop.f32.mrf.mxu1  ;;  %4614 = vmatmul.mubr.msk.bf16.gmra.mxu1 %vm452_vm2, %v5501_v50  ;;  %v2576_v50 = vsel %vm2110_vm4, %v2573_v63, %v2575_v3  ;;  %v2579_v63 = vrot.slane %v5895_v21, 2 }
  0xfd   : > { %v5867_v44 = vpop.f32.mrf.mxu0  ;;  %4648 = vmatmul.mubr.msk.bf16.gmra.mxu0 %vm452_vm2, %v2570_v54  ;;  %6745 = vst [vmem:[#allocation11_spill] sm:$0xff] %v5872_v18  ;;  %4617 = vmatprep.mubr.msk.bf16.mxu1 %vm452_vm2, %v5525_v40  ;;  %v2577_v40 = vrot.slane %v5887_v45, 2 }
  0xfe   : > { %4651 = vmatprep.mubr.msk.bf16.mxu0 %vm452_vm2, %v2572_v32  ;;  %v5881_v17 = vpop.f32.mrf.mxu1 }
  0xff   : > { %v5876_v46 = vpop.f32.mrf.mxu0  ;;  %6746 = vst [vmem:[#allocation12_spill] sm:$0xff] %v5881_v17  ;;  %v2873_v17 = vshrl.u32 %v5634_v55, 16  ;;  %v2578_v60 = vsel %vm2110_vm4, %v2575_v3, %v2577_v40 }
 0x100   : > { %v5889_v15 = vpop.f32.mrf.mxu1 }
 0x101   : > { %v5883_v13 = vpop.f32.mrf.mxu0  ;;  %6748 = vst [vmem:[#allocation14_spill] sm:$0xff] %v5889_v15  ;;  %v2868_v15 = vshll.u32 %v5720_v51, 16 }
 0x102   : > { %v5897_v11 = vpop.f32.mrf.mxu1 }
 0x103   : > { %v5891_v28 = vpop.f32.mrf.mxu0  ;;  %6750 = vst [vmem:[#allocation16_spill] sm:$0xff] %v5897_v11  ;;  %v2870_v21 = vrot.slane %v2868_v15, 3 }
 0x104   : > { %v4443_v1 = vpop.f32.mrf.mxu1  ;;  %4618 = vmatmul.mubr.msk.bf16.gmra.mxu1 %vm452_vm2, %v5531_v16  ;;  %v2876_v16 = vshll.u32 %v5634_v55, 16 }
 0x105   : > { %v5899_v54 = vpop.f32.mrf.mxu0  ;;  %4652 = vmatmul.mubr.msk.bf16.gmra.mxu0 %vm452_vm2, %v2574_v12  ;;  %v770_v26 = vadd.f32 %v4443_v1, %v5771_v33  ;;  %4621 = vmatprep.mubr.msk.bf16.mxu1 %vm452_vm2, %v5556_v42  ;;  %v2580_v42 = vsel %vm2110_vm4, %v2577_v40, %v2579_v63  ;;  %v2581_v40 = vrot.slane %v5921_v57, 2 }
 0x106   : > { %4655 = vmatprep.mubr.msk.bf16.mxu0 %vm452_vm2, %v2576_v50  ;;  %v761_v12 = vpop.f32.mrf.mxu1  ;;  %v2865_v50 = vshrl.u32 %v5720_v51, 16 }
 0x107   : > { %v5906_v32 = vpop.f32.mrf.mxu0  ;;  %v762_v18 = vadd.f32 %v761_v12, %v5780_v9  ;;  %v2875_v9 = vrot.slane %v2873_v17, 2  ;;  %v2878_v12 = vrot.slane %v2876_v16, 3 }
 0x108   : > { %v4444_v33 = vpop.f32.mrf.mxu1  ;;  %v2867_v55 = vrot.slane %v2865_v50, 2 }
 0x109   : > { %v5912_v11 = vpop.f32.mrf.mxu0  ;;  %v773_v47 = vadd.f32 %v4444_v33, %v5787_v0  ;;  %v2583_v33 = vrot.slane %v5927_v61, 2  ;;  %v2879_v16 = vor.u32 %v2878_v12, %v2875_v9 }
 0x10a   : > { %v764_v51 = vpop.f32.mrf.mxu1  ;;  %v2871_v50 = vor.u32 %v2870_v21, %v2867_v55 }
 0x10b   : > { %v5923_v1 = vpop.f32.mrf.mxu0  ;;  %v765_v3 = vadd.f32 %v764_v51, %v5795_v29  ;;  %v2885_v29 = vshll.u32 %v5639_v27, 16 }
 0x10c   : > { %v4447_v41 = vpop.f32.mrf.mxu1  ;;  %4622 = vmatmul.mubr.msk.bf16.gmra.mxu1 %vm452_vm2, %v5567_v6  ;;  %v2891_v6 = vshrl.u32 %v5733_v2, 16 }
 0x10d   : > { %v4481_v10 = vpop.f32.mrf.mxu0  ;;  %4656 = vmatmul.mubr.msk.bf16.gmra.mxu0 %vm452_vm2, %v2578_v60  ;;  %v786_v60 = vadd.f32 %v4447_v41, %v5803_v19  ;;  %4625 = vmatprep.mubr.msk.bf16.mxu1 %vm452_vm2, %v5598_v22  ;;  %v2582_v41 = vsel %vm2110_vm4, %v2579_v63, %v2581_v40  ;;  %v4858_v22 = vld [vmem:[%s5157_s7 + $0xa0] ss:$0 sps:$4 sm:$0x33]   ;;  %v2887_v9 = vrot.slane %v2885_v29, 3  ;;  %v2903_v29 = vshll.u32 %v5747_v59, 16 }
 0x10e   : > { %v5932_v45 = vadd.f32 %v4481_v10, %v770_v26  ;;  %4659 = vmatprep.mubr.msk.bf16.mxu0 %vm452_vm2, %v2580_v42  ;;  %v2882_v26 = vshrl.u32 %v5639_v27, 16  ;;  %v777_v10 = vpop.f32.mrf.mxu1  ;;  %v2894_v42 = vshll.u32 %v5733_v2, 16 }
 0x10f   : > { %v1039_v0 = vpop.f32.mrf.mxu0  ;;  %v778_v51 = vadd.f32 %v777_v10, %v5812_v62  ;;  %v2880_v62 = vsel %vm2863_vm7, %v2871_v50, %v2879_v16 }
 0x110   : > { %6752 = vst [vmem:[#allocation18_spill] sm:$0xff] %v5932_v45  ;;  %v5940_v17 = vadd.f32 %v1039_v0, %v762_v18  ;;  %v4448_v18 = vpop.f32.mrf.mxu1  ;;  %v2884_v55 = vrot.slane %v2882_v26, 2  ;;  %v2896_v63 = vrot.slane %v2894_v42, 3  ;;  %v2900_v26 = vshrl.u32 %v5747_v59, 16 }
 0x111   : > { %v4482_v15 = vpop.f32.mrf.mxu0  ;;  %v789_v45 = vadd.f32 %v4448_v18, %v5819_v36  ;;  %v2909_v42 = vshrl.u32 %v5753_v58, 16 }
 0x112   : > { %6753 = vst [vmem:[#allocation19_spill] sm:$0xff] %v5940_v17  ;;  %v5949_v19 = vadd.f32 %v4482_v15, %v773_v47  ;;  %v2584_v17 = vsel %vm2110_vm4, %v2581_v40, %v2583_v33  ;;  %v780_v12 = vpop.f32.mrf.mxu1  ;;  %v2893_v47 = vrot.slane %v2891_v6, 2  ;;  %v2585_v40 = vrot.slane %v4858_v22, 2 }
 0x113   : > { %v1042_v0 = vpop.f32.mrf.mxu0  ;;  %v781_v10 = vadd.f32 %v780_v12, %v5827_v39  ;;  %v2888_v39 = vor.u32 %v2887_v9, %v2884_v55  ;;  %v2905_v12 = vrot.slane %v2903_v29, 3 }
 0x114   : > { %v5955_v21 = vadd.f32 %v1042_v0, %v765_v3  ;;  %v4451_v36 = vpop.f32.mrf.mxu1  ;;  %4626 = vmatmul.mubr.msk.bf16.gmra.mxu1 %vm452_vm2, %v5604_v24  ;;  %v2586_v18 = vsel %vm2110_vm4, %v2583_v33, %v2585_v40 }
 0x115   : > { %v4485_v61 = vpop.f32.mrf.mxu0  ;;  %4660 = vmatmul.mubr.msk.bf16.gmra.mxu0 %vm452_vm2, %v2582_v41  ;;  %v802_v50 = vadd.f32 %v4451_v36, %v5835_v31  ;;  %4669 = vmatprep.mubr.msk.bf16.mxu1 %vm452_vm2, %v2880_v62  ;;  %v2912_v41 = vshll.u32 %v5753_v58, 16  ;;  %v2889_v9 = vsel %vm2863_vm7, %v2879_v16, %v2888_v39 }
 0x116   : > { %v5960_v15 = vadd.f32 %v4485_v61, %v786_v60  ;;  %4663 = vmatprep.mubr.msk.bf16.mxu0 %vm452_vm2, %v2584_v17  ;;  %v793_v61 = vpop.f32.mrf.mxu1  ;;  %v2897_v17 = vor.u32 %v2896_v63, %v2893_v47 }
 0x117   : > { %v1055_v3 = vpop.f32.mrf.mxu0  ;;  %v794_v24 = vadd.f32 %v793_v61, %v5844_v23  ;;  %v2914_v36 = vrot.slane %v2912_v41, 3 }
 0x118   : > { %v5968_v6 = vadd.f32 %v1055_v3, %v778_v51  ;;  %v4452_v0 = vpop.f32.mrf.mxu1  ;;  %v2902_v51 = vrot.slane %v2900_v26, 2  ;;  %v2898_v23 = vsel %vm2863_vm7, %v2888_v39, %v2897_v17  ;;  %v3316_v3 = vrot.slane %v5733_v2, 3 }
 0x119   : > { %v4486_v60 = vpop.f32.mrf.mxu0  ;;  %v805_v62 = vadd.f32 %v4452_v0, %v5851_v48  ;;  %v6754_v0 = vrot.slane %v5639_v27, 3 }
 0x11a   : > { %v5974_v22 = vadd.f32 %v4486_v60, %v789_v45  ;;  %v796_v47 = vpop.f32.mrf.mxu1  ;;  %v2911_v45 = vrot.slane %v2909_v42, 2  ;;  %v2906_v16 = vor.u32 %v2905_v12, %v2902_v51  ;;  %v2927_v60 = vshrl.u32 %v5769_v30, 16 }
 0x11b   : > { %v1058_v31 = vpop.f32.mrf.mxu0  ;;  %v797_v33 = vadd.f32 %v796_v47, %v5859_v5  ;;  %v2918_v5 = vshrl.u32 %v5765_v14, 16  ;;  %v2930_v42 = vshll.u32 %v5769_v30, 16 }
 0x11c   : > { %v5978_v55 = vadd.f32 %v1058_v31, %v781_v10  ;;  %v4455_v48 = vpop.f32.mrf.mxu1  ;;  %4670 = vmatmul.mubr.msk.bf16.vlgmr.msra.gmra.mxu1 %vm452_vm2, %v2889_v9  ;;  %v3317_v31 = vsel %vm3310_vm6, %v6754_v0, %v3316_v3 }
 0x11d   : > { %v4489_v63 = vpop.f32.mrf.mxu0  ;;  %4664 = vmatmul.mubr.msk.bf16.gmra.mxu0 %vm452_vm2, %v2586_v18  ;;  %v818_v26 = vadd.f32 %v4455_v48, %v5867_v44  ;;  %4673 = vmatprep.mubr.msk.bf16.mxu1 %vm452_vm2, %v2898_v23  ;;  %v2907_v18 = vsel %vm2863_vm7, %v2897_v17, %v2906_v16  ;;  %v2920_v9 = vrot.slane %v2918_v5, 2  ;;  %v3320_v48 = vrot.slane %v5753_v58, 3 }
 0x11e   : > { %v5984_v40 = vadd.f32 %v4489_v63, %v802_v50  ;;  %4707 = vmatprep.mubr.msk.bf16.mxu0 %vm452_vm2, %v5650_v37  ;;  %v2921_v50 = vshll.u32 %v5765_v14, 16  ;;  %v809_v39 = vpop.f32.mrf.mxu1  ;;  %v2915_v37 = vor.u32 %v2914_v36, %v2911_v45  ;;  %v2932_v45 = vrot.slane %v2930_v42, 3 }
 0x11f   : > { %v1071_v10 = vpop.f32.mrf.mxu0  ;;  %v810_v41 = vadd.f32 %v809_v39, %v5876_v46  ;;  %v2945_v39 = vshrl.u32 %v5799_v8, 16 }
 0x120   : > { %v5991_v29 = vadd.f32 %v1071_v10, %v794_v24  ;;  %v4456_v44 = vpop.f32.mrf.mxu1  ;;  %v2923_v47 = vrot.slane %v2921_v50, 3  ;;  %v2916_v46 = vsel %vm2863_vm7, %v2906_v16, %v2915_v37  ;;  %v2939_v10 = vshll.u32 %v5791_v20, 16 }
 0x121   : > { %v4490_v61 = vpop.f32.mrf.mxu0  ;;  %v821_v51 = vadd.f32 %v4456_v44, %v5883_v13  ;;  %v3318_v13 = vrot.slane %v5747_v59, 3 }
 0x122   : > { %v5999_v2 = vadd.f32 %v4490_v61, %v805_v62  ;;  %v812_v63 = vpop.f32.mrf.mxu1  ;;  %v2929_v62 = vrot.slane %v2927_v60, 2  ;;  %v2948_v61 = vshll.u32 %v5799_v8, 16 }
 0x123   : > { %v1074_v24 = vpop.f32.mrf.mxu0  ;;  %v813_v17 = vadd.f32 %v812_v63, %v5891_v28  ;;  %v2924_v28 = vor.u32 %v2923_v47, %v2920_v9  ;;  %v3319_v42 = vsel %vm3310_vm6, %v3316_v3, %v3318_v13 }
 0x124   : > { %v6006_v12 = vadd.f32 %v1074_v24, %v797_v33  ;;  %v4459_v36 = vpop.f32.mrf.mxu1  ;;  %4674 = vmatmul.mubr.msk.bf16.gmra.mxu1 %vm452_vm2, %v2907_v18  ;;  %v2933_v59 = vor.u32 %v2932_v45, %v2929_v62  ;;  %v2941_v18 = vrot.slane %v2939_v10, 3  ;;  %v2950_v3 = vrot.slane %v2948_v61, 3 }
 0x125   : > { %v4493_v23 = vpop.f32.mrf.mxu0  ;;  %4708 = vmatmul.mubr.msk.bf16.vlgmr.msra.gmra.mxu0 %vm452_vm2, %v5658_v43  ;;  %v2936_v43 = vshrl.u32 %v5791_v20, 16  ;;  %v834_v16 = vadd.f32 %v4459_v36, %v5899_v54  ;;  %4677 = vmatprep.mubr.msk.bf16.mxu1 %vm452_vm2, %v2916_v46  ;;  %v2925_v9 = vsel %vm2863_vm7, %v2915_v37, %v2924_v28  ;;  %v2954_v36 = vshrl.u32 %v5823_v53, 16 }
 0x126   : > { %v6012_v27 = vadd.f32 %v4493_v23, %v818_v26  ;;  %4711 = vmatprep.mubr.msk.bf16.mxu0 %vm452_vm2, %v3317_v31  ;;  %v825_v26 = vpop.f32.mrf.mxu1 }
 0x127   : > { %v1087_v33 = vpop.f32.mrf.mxu0  ;;  %v826_v58 = vadd.f32 %v825_v26, %v5906_v32  ;;  %v2938_v24 = vrot.slane %v2936_v43, 2  ;;  %v2934_v32 = vsel %vm2863_vm7, %v2924_v28, %v2933_v59 }
 0x128   : > { %v6021_v5 = vadd.f32 %v1087_v33, %v810_v41  ;;  %v4460_v44 = vpop.f32.mrf.mxu1  ;;  %v3321_v41 = vsel %vm3310_vm6, %v3318_v13, %v3320_v48 }
 0x129   : > { %v4494_v50 = vpop.f32.mrf.mxu0  ;;  %v837_v0 = vadd.f32 %v4460_v44, %v5912_v11  ;;  %v3322_v11 = vrot.slane %v5765_v14, 3  ;;  %v2942_v45 = vor.u32 %v2941_v18, %v2938_v24  ;;  %v2963_v14 = vshrl.u32 %v5831_v49, 16 }
 0x12a   : > { %v6027_v60 = vadd.f32 %v4494_v50, %v821_v51  ;;  %v828_v47 = vpop.f32.mrf.mxu1  ;;  %v2947_v51 = vrot.slane %v2945_v39, 2  ;;  %v2956_v44 = vrot.slane %v2954_v36, 2  ;;  %v2984_v36 = vshll.u32 %v5863_v4, 16 }
 0x12b   : > { %v1090_v54 = vpop.f32.mrf.mxu0  ;;  %v829_v23 = vadd.f32 %v828_v47, %v5923_v1  ;;  %v2957_v1 = vshll.u32 %v5823_v53, 16  ;;  %v3323_v26 = vsel %vm3310_vm6, %v3320_v48, %v3322_v11  ;;  %v2943_v39 = vsel %vm2863_vm7, %v2933_v59, %v2942_v45 }
 0x12c   : > { %v6032_v31 = vadd.f32 %v1090_v54, %v813_v17  ;;  %v4463_v62 = vpop.f32.mrf.mxu1  ;;  %4678 = vmatmul.mubr.msk.bf16.gmra.mxu1 %vm452_vm2, %v2925_v9  ;;  %v3324_v17 = vrot.slane %v5769_v30, 3  ;;  %v2951_v10 = vor.u32 %v2950_v3, %v2947_v51  ;;  %v2972_v51 = vshrl.u32 %v5855_v56, 16 }
 0x12d   : > { %v4497_v63 = vpop.f32.mrf.mxu0  ;;  %4712 = vmatmul.mubr.msk.bf16.gmra.mxu0 %vm452_vm2, %v3319_v42  ;;  %4681 = vmatprep.mubr.msk.bf16.mxu1 %vm452_vm2, %v2934_v32  ;;  %v2959_v54 = vrot.slane %v2957_v1, 3  ;;  %v3328_v32 = vrot.slane %v5799_v8, 3  ;;  %v2975_v3 = vshll.u32 %v5855_v56, 16 }
 0x12e   : > { %v6038_v46 = vadd.f32 %v4497_v63, %v834_v16  ;;  %4715 = vmatprep.mubr.msk.bf16.mxu0 %vm452_vm2, %v3321_v41  ;;  %v841_v33 = vpop.f32.mrf.mxu1  ;;  %v2966_v16 = vshll.u32 %v5831_v49, 16  ;;  %v3325_v61 = vsel %vm3310_vm6, %v3322_v11, %v3324_v17  ;;  %v2952_v18 = vsel %vm2863_vm7, %v2942_v45, %v2951_v10 }
 0x12f   : > { %v1103_v37 = vpop.f32.mrf.mxu0  ;;  %v842_v9 = vadd.f32 %v841_v33, %v5785_v38  ;;  %v2960_v38 = vor.u32 %v2959_v54, %v2956_v44  ;;  %v2981_v45 = vshrl.u32 %v5863_v4, 16 }
 0x130   : > { %v6044_v13 = vadd.f32 %v1103_v37, %v826_v58  ;;  %v4464_v30 = vpop.f32.mrf.mxu1  ;;  %v850_v58 = vadd.f32 %v4463_v62, %v5776_v52  ;;  %v2968_v48 = vrot.slane %v2966_v16, 3  ;;  %v3326_v52 = vrot.slane %v5791_v20, 3 }
 0x131   : > { %v4498_v43 = vpop.f32.mrf.mxu0  ;;  %v2974_v16 = vrot.slane %v2972_v51, 2  ;;  %v2983_v44 = vrot.slane %v2981_v45, 2 }
 0x132   : > { %v6051_v28 = vadd.f32 %v4498_v43, %v837_v0  ;;  %v844_v41 = vpop.f32.mrf.mxu1  ;;  %v2965_v0 = vrot.slane %v2963_v14, 2  ;;  %v3327_v33 = vsel %vm3310_vm6, %v3324_v17, %v3326_v52  ;;  %v3329_v14 = vsel %vm3310_vm6, %v3326_v52, %v3328_v32 }
 0x133   : > { %v1106_v50 = vpop.f32.mrf.mxu0  ;;  %v845_v8 = vadd.f32 %v844_v41, %v5801_v25  ;;  %v2986_v17 = vrot.slane %v2984_v36, 3 }
 0x134   : > { %v6057_v42 = vadd.f32 %v1106_v50, %v829_v23  ;;  %v4467_v59 = vpop.f32.mrf.mxu1  ;;  %4682 = vmatmul.mubr.msk.bf16.gmra.mxu1 %vm452_vm2, %v2943_v39  ;;  %v853_v23 = vadd.f32 %v4464_v30, %v5793_v7  ;;  %v2969_v20 = vor.u32 %v2968_v48, %v2965_v0  ;;  %v2961_v39 = vsel %vm2863_vm7, %v2951_v10, %v2960_v38  ;;  %v6755_v48 = vld [vmem:[#allocation5_spill] sm:$0xff] }
 0x135   : > { %v4501_v24 = vpop.f32.mrf.mxu0  ;;  %4716 = vmatmul.mubr.msk.bf16.gmra.mxu0 %vm452_vm2, %v3323_v26  ;;  %4685 = vmatprep.mubr.msk.bf16.mxu1 %vm452_vm2, %v2952_v18  ;;  %v2977_v26 = vrot.slane %v2975_v3, 3  ;;  %v866_v30 = vadd.f32 %v4467_v59, %v5808_v34  ;;  %v3330_v34 = vrot.slane %v5823_v53, 3  ;;  %v3332_v0 = vrot.slane %v5831_v49, 3 }
 0x136   : > { %v6062_v47 = vadd.f32 %v4501_v24, %v850_v58  ;;  %4719 = vmatprep.mubr.msk.bf16.mxu0 %vm452_vm2, %v3325_v61  ;;  %v857_v62 = vpop.f32.mrf.mxu1  ;;  %v2970_v25 = vsel %vm2863_vm7, %v2960_v38, %v2969_v20  ;;  %v2987_v53 = vor.u32 %v2986_v17, %v2983_v44  ;;  %v6760_v17 = vld [vmem:[#allocation8_spill] sm:$0xff] }
 0x137   : > { %v1119_v63 = vpop.f32.mrf.mxu0  ;;  %v858_v54 = vadd.f32 %v857_v62, %v5817_v35  ;;  %v2978_v18 = vor.u32 %v2977_v26, %v2974_v16  ;;  %v6756_v35 = vld [vmem:[#allocation13_spill] sm:$0xff]  ;;  %v3331_v36 = vsel %vm3310_vm6, %v3328_v32, %v3330_v34 }
 0x138   : > { %v6071_v11 = vadd.f32 %v1119_v63, %v842_v9  ;;  %v4468_v43 = vpop.f32.mrf.mxu1  ;;  %v2990_v59 = vshrl.u32 %v6756_v35, 16  ;;  %v2993_v63 = vshll.u32 %v6756_v35, 16 }
 0x139   : > { %v4502_v37 = vpop.f32.mrf.mxu0  ;;  %v869_v9 = vadd.f32 %v4468_v43, %v6755_v48  ;;  %v2979_v43 = vsel %vm2863_vm7, %v2969_v20, %v2978_v18  ;;  %v3334_v20 = vrot.slane %v5855_v56, 3  ;;  %v3336_v48 = vrot.slane %v5863_v4, 3  ;;  %v6763_v4 = vld [vmem:[#allocation10_spill] sm:$0xff] }
 0x13a   : > { %v6077_v1 = vadd.f32 %v4502_v37, %v853_v23  ;;  %v860_v61 = vpop.f32.mrf.mxu1  ;;  %v6757_v23 = vld [vmem:[#allocation15_spill] sm:$0xff]  ;;  %v6758_v37 = vld [vmem:[#allocation6_spill] sm:$0xff] }
 0x13b   : > { %v1122_v7 = vpop.f32.mrf.mxu0  ;;  %v2999_v38 = vshrl.u32 %v6757_v23, 16  ;;  %v3002_v62 = vshll.u32 %v6757_v23, 16  ;;  %v861_v45 = vadd.f32 %v860_v61, %v6758_v37  ;;  %v2988_v61 = vsel %vm2863_vm7, %v2978_v18, %v2987_v53  ;;  %v6762_v37 = vld [vmem:[#allocation17_spill] sm:$0xff] }
 0x13c   : > { %v6082_v50 = vadd.f32 %v1122_v7, %v845_v8  ;;  %v4471_v24 = vpop.f32.mrf.mxu1  ;;  %4686 = vmatmul.mubr.msk.bf16.gmra.mxu1 %vm452_vm2, %v2961_v39  ;;  %v3333_v7 = vsel %vm3310_vm6, %v3330_v34, %v3332_v0  ;;  %v2995_v39 = vrot.slane %v2993_v63, 3  ;;  %v3011_v18 = vshll.u32 %v5921_v57, 16 }
 0x13d   : > { %v4505_v58 = vpop.f32.mrf.mxu0  ;;  %4720 = vmatmul.mubr.msk.bf16.gmra.mxu0 %vm452_vm2, %v3327_v33  ;;  %4689 = vmatprep.mubr.msk.bf16.mxu1 %vm452_vm2, %v2970_v25  ;;  %v3001_v44 = vrot.slane %v2999_v38, 2  ;;  %v3004_v32 = vrot.slane %v3002_v62, 3 }
 0x13e   : > { %v6088_v41 = vadd.f32 %v4505_v58, %v866_v30  ;;  %4723 = vmatprep.mubr.msk.bf16.mxu0 %vm452_vm2, %v3329_v14  ;;  %v873_v51 = vpop.f32.mrf.mxu1  ;;  %v6759_v14 = vld [vmem:[#allocation7_spill] sm:$0xff]  ;;  %v2992_v30 = vrot.slane %v2990_v59, 2  ;;  %v6761_v59 = vld [vmem:[#allocation9_spill] sm:$0xff] }
 0x13f   : > { %v1135_v10 = vpop.f32.mrf.mxu0  ;;  %v882_v16 = vadd.f32 %v4471_v24, %v6759_v14  ;;  %v3005_v62 = vor.u32 %v3004_v32, %v3001_v44 }
 0x140   : > { %v6095_v52 = vadd.f32 %v1135_v10, %v858_v54  ;;  %v4472_v8 = vpop.f32.mrf.mxu1  ;;  %v874_v54 = vadd.f32 %v873_v51, %v6760_v17  ;;  %v2996_v51 = vor.u32 %v2995_v39, %v2992_v30  ;;  %v6134_v30 = vld [vmem:[%s5157_s7 + $0xa0] ss:$0 sps:$4 sm:$0x77]   ;;  %v6764_v39 = vld [vmem:[#allocation11_spill] sm:$0xff]  ;;  %s4757_s7 = smul.u32 4608, %s5111_s16  ;;  %s6686_s16 = scalar_lea.sflag [#allocation3], %s161_s4 }
 0x141   : > { %v4506_v3 = vpop.f32.mrf.mxu0  ;;  %v885_v63 = vadd.f32 %v4472_v8, %v6761_v59 }
 0x142   : > { %v6103_v49 = vadd.f32 %v4506_v3, %v869_v9  ;;  %v876_v58 = vpop.f32.mrf.mxu1  ;;  %v3008_v9 = vshrl.u32 %v5921_v57, 16  ;;  %v2997_v17 = vsel %vm2863_vm7, %v2987_v53, %v2996_v51  ;;  %s6677_s11 = scalar_lea.hbm %s6729_s3, %s4757_s7 }
 0x143   : > { %v1138_v33 = vpop.f32.mrf.mxu0 }
 0x144   : > { %v6109_v26 = vadd.f32 %v1138_v33, %v861_v45  ;;  %v4475_v34 = vpop.f32.mrf.mxu1  ;;  %4690 = vmatmul.mubr.msk.bf16.gmra.mxu1 %vm452_vm2, %v2979_v43  ;;  %v3017_v45 = vshrl.u32 %v6762_v37, 16  ;;  %v877_v33 = vadd.f32 %v876_v58, %v6763_v4  ;;  %v3340_v4 = vrot.slane %v6757_v23, 3 }
 0x145   : > { %v4509_v25 = vpop.f32.mrf.mxu0  ;;  %4724 = vmatmul.mubr.msk.bf16.gmra.mxu0 %vm452_vm2, %v3331_v36  ;;  %4693 = vmatprep.mubr.msk.bf16.mxu1 %vm452_vm2, %v2988_v61  ;;  %v3020_v36 = vshll.u32 %v6762_v37, 16  ;;  %v3013_v61 = vrot.slane %v3011_v18, 3  ;;  %v898_v44 = vadd.f32 %v4475_v34, %v6764_v39  ;;  %v3338_v34 = vrot.slane %v6756_v35, 3 }
 0x146   : > { %v6114_v10 = vadd.f32 %v4509_v25, %v882_v16  ;;  %4727 = vmatprep.mubr.msk.bf16.mxu0 %vm452_vm2, %v3333_v7  ;;  %v889_v38 = vpop.f32.mrf.mxu1  ;;  %v3335_v7 = vsel %vm3310_vm6, %v3332_v0, %v3334_v20  ;;  %v3337_v16 = vsel %vm3310_vm6, %v3334_v20, %v3336_v48  ;;  %v3010_v25 = vrot.slane %v3008_v9, 2 }
 0x147   : > { %v1151_v24 = vpop.f32.mrf.mxu0  ;;  %v3006_v0 = vsel %vm2863_vm7, %v2996_v51, %v3005_v62  ;;  %v3022_v59 = vrot.slane %v3020_v36, 3  ;;  %v6766_v51 = vld [vmem:[#allocation14_spill] sm:$0xff] }
 0x148   : > { %v6123_v3 = vadd.f32 %v1151_v24, %v874_v54  ;;  %v4476_v8 = vpop.f32.mrf.mxu1  ;;  %v3019_v24 = vrot.slane %v3017_v45, 2  ;;  %v6767_v36 = vld [vmem:[#allocation18_spill] sm:$0xff] }
 0x149   : > { %v4510_v56 = vpop.f32.mrf.mxu0  ;;  %v901_v45 = vadd.f32 %v4476_v8, %v6766_v51 }
 0x14a   : > { %v6129_v43 = vadd.f32 %v4510_v56, %v885_v63  ;;  %v892_v54 = vpop.f32.mrf.mxu1  ;;  %v6765_v63 = vld [vmem:[#allocation12_spill] sm:$0xff]  ;;  %v3014_v56 = vor.u32 %v3013_v61, %v3010_v25  ;;  %v3023_v39 = vor.u32 %v3022_v59, %v3019_v24  ;;  %v6769_v25 = vld [vmem:[#allocation19_spill] sm:$0xff] }
 0x14b   : > { %v1154_v14 = vpop.f32.mrf.mxu0  ;;  %v890_v20 = vadd.f32 %v889_v38, %v6765_v63 }
 0x14c   : > { %v6137_v32 = vadd.f32 %v1154_v14, %v877_v33  ;;  %v4519_v18 = vpop.f32.mrf.mxu1  ;;  %4694 = vmatmul.mubr.msk.bf16.gmra.mxu1 %vm452_vm2, %v2997_v17  ;;  %v3026_v33 = vshrl.u32 %v6134_v30, 16  ;;  %v3029_v14 = vshll.u32 %v6134_v30, 16 }
 0x14d   : > { %v4513_v58 = vpop.f32.mrf.mxu0  ;;  %4728 = vmatmul.mubr.msk.bf16.gmra.mxu0 %vm452_vm2, %v3335_v7  ;;  %v1623_v7 = vadd.f32 %v4519_v18, %v6767_v36  ;;  %4697 = vmatprep.mubr.msk.bf16.mxu1 %vm452_vm2, %v3006_v0  ;;  %v3341_v18 = vsel %vm3310_vm6, %v3338_v34, %v3340_v4 }
 0x14e   : > { %v6143_v9 = vadd.f32 %v4513_v58, %v898_v44  ;;  %4731 = vmatprep.mubr.msk.bf16.mxu0 %vm452_vm2, %v3337_v16  ;;  %v1478_v35 = vpop.f32.mrf.mxu1  ;;  %v6768_v44 = vld [vmem:[#allocation16_spill] sm:$0xff]  ;;  %v3339_v58 = vsel %vm3310_vm6, %v3336_v48, %v3338_v34  ;;  %v3028_v51 = vrot.slane %v3026_v33, 2  ;;  %v3031_v24 = vrot.slane %v3029_v14, 3 }
 0x14f   : > { %v1167_v53 = vpop.f32.mrf.mxu0  ;;  %v893_v17 = vadd.f32 %v892_v54, %v6768_v44  ;;  %v1621_v61 = vadd.f32 %v1478_v35, %v6769_v25  ;;  %v3344_v33 = vrot.slane %v6762_v37, 3 }
 0x150   : > { %v6152_v38 = vadd.f32 %v1167_v53, %v890_v20  ;;  %v4520_v8 = vpop.f32.mrf.mxu1  ;;  %v3015_v20 = vsel %vm2863_vm7, %v3005_v62, %v3014_v56  ;;  %v3342_v62 = vrot.slane %v5921_v57, 3 }
 0x151   : > { %v4514_v16 = vpop.f32.mrf.mxu0  ;;  %v1624_v0 = vadd.f32 %v4520_v8, %v5949_v19 }
 0x152   : > { %v6158_v23 = vadd.f32 %v4514_v16, %v901_v45  ;;  %v1481_v59 = vpop.f32.mrf.mxu1  ;;  %v3024_v45 = vsel %vm2863_vm7, %v3014_v56, %v3023_v39  ;;  %v3032_v56 = vor.u32 %v3031_v24, %v3028_v51  ;;  %v3343_v57 = vsel %vm3310_vm6, %v3340_v4, %v3342_v62 }
 0x153   : > { %v1170_v63 = vpop.f32.mrf.mxu0  ;;  %v1622_v48 = vadd.f32 %v1481_v59, %v5955_v21  ;;  %v3346_v4 = vrot.slane %v6134_v30, 3 }
 0x154   : > { %v6164_v53 = vadd.f32 %v1170_v63, %v893_v17  ;;  %v4523_v34 = vpop.f32.mrf.mxu1  ;;  %4698 = vmatmul.mubr.msk.bf16.gmra.mxu1 %vm452_vm2, %v3015_v20 }
 0x155   : > { %v4557_v54 = vpop.f32.mrf.mxu0  ;;  %4732 = vmatmul.mubr.msk.bf16.gmra.mxu0 %vm452_vm2, %v3339_v58  ;;  %v1627_v14 = vadd.f32 %v4523_v34, %v5960_v15  ;;  %4701 = vmatprep.mubr.msk.bf16.mxu1 %vm452_vm2, %v3024_v45  ;;  %v3345_v58 = vsel %vm3310_vm6, %v3342_v62, %v3344_v33 }
 0x156   : > { %v6169_v36 = vadd.f32 %v4557_v54, %v1623_v7  ;;  %4735 = vmatprep.mubr.msk.bf16.mxu0 %vm452_vm2, %v3341_v18  ;;  %v1494_v21 = vpop.f32.mrf.mxu1 }
 0x157   : > { %v1925_v19 = vpop.f32.mrf.mxu0  ;;  %v1625_v16 = vadd.f32 %v1494_v21, %v5968_v6 }
 0x158   : > { %v6176_v35 = vadd.f32 %v1925_v19, %v1621_v61  ;;  %v4524_v17 = vpop.f32.mrf.mxu1  ;;  %v3033_v61 = vsel %vm2863_vm7, %v3023_v39, %v3032_v56 }
 0x159   : > { %v4558_v7 = vpop.f32.mrf.mxu0  ;;  %v1628_v37 = vadd.f32 %v4524_v17, %v5974_v22 }
 0x15a   : > { %v6180_v44 = vadd.f32 %v4558_v7, %v1624_v0  ;;  %v1497_v8 = vpop.f32.mrf.mxu1 }
 0x15b   : > { %v1928_v25 = vpop.f32.mrf.mxu0  ;;  %v1626_v6 = vadd.f32 %v1497_v8, %v5978_v55  ;;  %v3347_v55 = vsel %vm3310_vm6, %v3344_v33, %v3346_v4 }
 0x15c   : > { %v6185_v15 = vadd.f32 %v1928_v25, %v1622_v48  ;;  %v4527_v18 = vpop.f32.mrf.mxu1  ;;  %4702 = vmatmul.mubr.msk.bf16.gmra.mxu1 %vm452_vm2, %v3033_v61 }
 0x15d   : > { %v4561_v63 = vpop.f32.mrf.mxu0  ;;  %4736 = vmatmul.mubr.msk.bf16.gmra.mxu0 %vm452_vm2, %v3343_v57  ;;  %v1631_v0 = vadd.f32 %v4527_v18, %v5984_v40 }
 0x15e   : > { %v6190_v20 = vadd.f32 %v4561_v63, %v1627_v14  ;;  %4739 = vmatprep.mubr.msk.bf16.mxu0 %vm452_vm2, %v3345_v58  ;;  %v1510_v39 = vpop.f32.mrf.mxu1 }
 0x15f   : > { %v1941_v22 = vpop.f32.mrf.mxu0  ;;  %v1629_v59 = vadd.f32 %v1510_v39, %v5991_v29 }
 0x160   : > { %v6196_v51 = vadd.f32 %v1941_v22, %v1625_v16  ;;  %v4528_v45 = vpop.f32.mrf.mxu1 }
 0x161   : > { %v4562_v24 = vpop.f32.mrf.mxu0  ;;  %v1632_v30 = vadd.f32 %v4528_v45, %v5999_v2 }
 0x162   : > { %v6199_v54 = vadd.f32 %v4562_v24, %v1628_v37  ;;  %v1513_v34 = vpop.f32.mrf.mxu1 }
 0x163   : > { %v1944_v48 = vpop.f32.mrf.mxu0  ;;  %v1630_v40 = vadd.f32 %v1513_v34, %v6006_v12 }
 0x164   : > { %v6203_v62 = vadd.f32 %v1944_v48, %v1626_v6  ;;  %v4531_v56 = vpop.f32.mrf.mxu1 }
 0x165   : > { %v4565_v19 = vpop.f32.mrf.mxu0  ;;  %4740 = vmatmul.mubr.msk.bf16.gmra.mxu0 %vm452_vm2, %v3347_v55  ;;  %v1635_v21 = vadd.f32 %v4531_v56, %v6012_v27 }
 0x166   : > { %v6207_v14 = vadd.f32 %v4565_v19, %v1631_v0  ;;  %v1526_v33 = vpop.f32.mrf.mxu1 }
 0x167   : > { %v1957_v29 = vpop.f32.mrf.mxu0  ;;  %v1633_v2 = vadd.f32 %v1526_v33, %v6021_v5 }
 0x168   : > { %v6210_v7 = vadd.f32 %v1957_v29, %v1629_v59  ;;  %v4532_v17 = vpop.f32.mrf.mxu1 }
 0x169   : > { %v4566_v16 = vpop.f32.mrf.mxu0  ;;  %v1636_v58 = vadd.f32 %v4532_v17, %v6027_v60 }
 0x16a   : > { %v6213_v57 = vadd.f32 %v4566_v16, %v1632_v30  ;;  %v1529_v12 = vpop.f32.mrf.mxu1 }
 0x16b   : > { %v1960_v25 = vpop.f32.mrf.mxu0  ;;  %v1634_v8 = vadd.f32 %v1529_v12, %v6032_v31 }
 0x16c   : > { %v6216_v37 = vadd.f32 %v1960_v25, %v1630_v40  ;;  %v4535_v27 = vpop.f32.mrf.mxu1 }
 0x16d   : > { %v4569_v61 = vpop.f32.mrf.mxu0  ;;  %v1639_v4 = vadd.f32 %v4535_v27, %v6038_v46 }
 0x16e   : > { %v6219_v63 = vadd.f32 %v4569_v61, %v1635_v21  ;;  %v1542_v5 = vpop.f32.mrf.mxu1 }
 0x16f   : > { %v1973_v6 = vpop.f32.mrf.mxu0  ;;  %v1637_v0 = vadd.f32 %v1542_v5, %v6044_v13 }
 0x170   : > { %v6222_v18 = vadd.f32 %v1973_v6, %v1633_v2  ;;  %v4536_v60 = vpop.f32.mrf.mxu1 }
 0x171   : > { %v4570_v22 = vpop.f32.mrf.mxu0  ;;  %v1640_v59 = vadd.f32 %v4536_v60, %v6051_v28 }
 0x172   : > { %v6225_v39 = vadd.f32 %v4570_v22, %v1636_v58  ;;  %v1545_v31 = vpop.f32.mrf.mxu1 }
 0x173   : > { %v1976_v24 = vpop.f32.mrf.mxu0  ;;  %v1638_v48 = vadd.f32 %v1545_v31, %v6057_v42 }
 0x174   : > { %v6228_v55 = vadd.f32 %v1976_v24, %v1634_v8  ;;  %v4539_v46 = vpop.f32.mrf.mxu1 }
 0x175   : > { %v4573_v45 = vpop.f32.mrf.mxu0  ;;  %v1643_v19 = vadd.f32 %v4539_v46, %v6062_v47 }
 0x176   : > { %v6231_v30 = vadd.f32 %v4573_v45, %v1639_v4  ;;  %v1558_v13 = vpop.f32.mrf.mxu1 }
 0x177   : > { %v1989_v34 = vpop.f32.mrf.mxu0  ;;  %v1641_v29 = vadd.f32 %v1558_v13, %v6071_v11 }
 0x178   : > { %v6234_v40 = vadd.f32 %v1989_v34, %v1637_v0  ;;  %v4540_v28 = vpop.f32.mrf.mxu1 }
 0x179   : > { %v4574_v56 = vpop.f32.mrf.mxu0  ;;  %v1644_v16 = vadd.f32 %v4540_v28, %v6077_v1 }
 0x17a   : > { %v6237_v21 = vadd.f32 %v4574_v56, %v1640_v59  ;;  %v1561_v42 = vpop.f32.mrf.mxu1 }
 0x17b   : > { %v1992_v33 = vpop.f32.mrf.mxu0  ;;  %v1642_v25 = vadd.f32 %v1561_v42, %v6082_v50 }
 0x17c   : > { %v6240_v2 = vadd.f32 %v1992_v33, %v1638_v48  ;;  %v4543_v47 = vpop.f32.mrf.mxu1 }
 0x17d   : > { %v4577_v17 = vpop.f32.mrf.mxu0  ;;  %v1647_v61 = vadd.f32 %v4543_v47, %v6088_v41 }
 0x17e   : > { %v6243_v58 = vadd.f32 %v4577_v17, %v1643_v19  ;;  %v1574_v11 = vpop.f32.mrf.mxu1 }
 0x17f   : > { %v2005_v12 = vpop.f32.mrf.mxu0  ;;  %v1645_v6 = vadd.f32 %v1574_v11, %v6095_v52 }
 0x180   : > { %v6246_v8 = vadd.f32 %v2005_v12, %v1641_v29  ;;  %v4544_v1 = vpop.f32.mrf.mxu1 }
 0x181   : > { %v4578_v27 = vpop.f32.mrf.mxu0  ;;  %v1648_v22 = vadd.f32 %v4544_v1, %v6103_v49 }
 0x182   : > { %v6249_v4 = vadd.f32 %v4578_v27, %v1644_v16  ;;  %v1577_v50 = vpop.f32.mrf.mxu1 }
 0x183   : > { %v2008_v5 = vpop.f32.mrf.mxu0  ;;  %v1646_v24 = vadd.f32 %v1577_v50, %v6109_v26 }
 0x184   : > { %v6252_v0 = vadd.f32 %v2008_v5, %v1642_v25  ;;  %v4547_v41 = vpop.f32.mrf.mxu1 }
 0x185   : > { %v4581_v60 = vpop.f32.mrf.mxu0  ;;  %v1651_v45 = vadd.f32 %v4547_v41, %v6114_v10 }
 0x186   : > { %v6255_v59 = vadd.f32 %v4581_v60, %v1647_v61  ;;  %v1590_v52 = vpop.f32.mrf.mxu1 }
 0x187   : > { %v2021_v31 = vpop.f32.mrf.mxu0  ;;  %v1649_v34 = vadd.f32 %v1590_v52, %v6123_v3 }
 0x188   : > { %v6258_v48 = vadd.f32 %v2021_v31, %v1645_v6  ;;  %v4548_v49 = vpop.f32.mrf.mxu1 }
 0x189   : > { %v4582_v46 = vpop.f32.mrf.mxu0  ;;  %v1652_v56 = vadd.f32 %v4548_v49, %v6129_v43 }
 0x18a   : > { %v6261_v19 = vadd.f32 %v4582_v46, %v1648_v22  ;;  %v1593_v26 = vpop.f32.mrf.mxu1 }
 0x18b   : > { %v2024_v13 = vpop.f32.mrf.mxu0  ;;  %v1650_v33 = vadd.f32 %v1593_v26, %v6137_v32 }
 0x18c   : > { %v6264_v29 = vadd.f32 %v2024_v13, %v1646_v24  ;;  %v4551_v10 = vpop.f32.mrf.mxu1 }
 0x18d   : > { %v4585_v28 = vpop.f32.mrf.mxu0  ;;  %v1655_v17 = vadd.f32 %v4551_v10, %v6143_v9 }
 0x18e   : > { %v6267_v16 = vadd.f32 %v4585_v28, %v1651_v45  ;;  %v1606_v3 = vpop.f32.mrf.mxu1 }
 0x18f   : > { %v2037_v42 = vpop.f32.mrf.mxu0  ;;  %v1653_v12 = vadd.f32 %v1606_v3, %v6152_v38 }
 0x190   : > { %v6270_v25 = vadd.f32 %v2037_v42, %v1649_v34  ;;  %v4552_v43 = vpop.f32.mrf.mxu1 }
 0x191   : > { %v4586_v47 = vpop.f32.mrf.mxu0  ;;  %v1656_v27 = vadd.f32 %v4552_v43, %v6158_v23 }
 0x192   : > { %v6273_v61 = vadd.f32 %v4586_v47, %v1652_v56  ;;  %v1609_v32 = vpop.f32.mrf.mxu1 }
 0x193   : > { %v2040_v11 = vpop.f32.mrf.mxu0  ;;  %v1654_v5 = vadd.f32 %v1609_v32, %v6164_v53 }
 0x194   : > { %v6276_v6 = vadd.f32 %v2040_v11, %v1650_v33  ;;  %v4595_v9 = vpop.f32.mrf.mxu1 }
 0x195   : > { %v4589_v1 = vpop.f32.mrf.mxu0  ;;  %v2384_v60 = vadd.f32 %v4595_v9, %v6169_v36 }
 0x196   : > { %v6279_v22 = vadd.f32 %v4589_v1, %v1655_v17  ;;  %v2239_v38 = vpop.f32.mrf.mxu1 }
 0x197   : > { %v2053_v50 = vpop.f32.mrf.mxu0  ;;  %v2382_v31 = vadd.f32 %v2239_v38, %v6176_v35 }
 0x198   : > { %v6282_v24 = vadd.f32 %v2053_v50, %v1653_v12  ;;  %v4596_v23 = vpop.f32.mrf.mxu1 }
 0x199   : > { %v4590_v41 = vpop.f32.mrf.mxu0  ;;  %v2385_v46 = vadd.f32 %v4596_v23, %v6180_v44 }
 0x19a   : > { %v6285_v45 = vadd.f32 %v4590_v41, %v1656_v27  ;;  %v2242_v53 = vpop.f32.mrf.mxu1 }
 0x19b   : > { %v2056_v52 = vpop.f32.mrf.mxu0  ;;  %v2383_v13 = vadd.f32 %v2242_v53, %v6185_v15 }
 0x19c   : > { %v6288_v34 = vadd.f32 %v2056_v52, %v1654_v5  ;;  %v4599_v36 = vpop.f32.mrf.mxu1 }
 0x19d   : > { %v4633_v49 = vpop.f32.mrf.mxu0  ;;  %v2388_v28 = vadd.f32 %v4599_v36, %v6190_v20 }
 0x19e   : > { %v6291_v56 = vadd.f32 %v4633_v49, %v2384_v60  ;;  %v2255_v35 = vpop.f32.mrf.mxu1 }
 0x19f   : > { %v2678_v26 = vpop.f32.mrf.mxu0  ;;  %v2386_v42 = vadd.f32 %v2255_v35, %v6196_v51 }
 0x1a0   : > { %v6294_v33 = vadd.f32 %v2678_v26, %v2382_v31  ;;  %v4600_v44 = vpop.f32.mrf.mxu1 }
 0x1a1   : > { %v4634_v10 = vpop.f32.mrf.mxu0  ;;  %v2389_v47 = vadd.f32 %v4600_v44, %v6199_v54 }
 0x1a2   : > { %v6297_v17 = vadd.f32 %v4634_v10, %v2385_v46  ;;  %v2258_v15 = vpop.f32.mrf.mxu1 }
 0x1a3   : > { %v2681_v3 = vpop.f32.mrf.mxu0  ;;  %v2387_v11 = vadd.f32 %v2258_v15, %v6203_v62 }
 0x1a4   : > { %v6300_v12 = vadd.f32 %v2681_v3, %v2383_v13  ;;  %v4603_v20 = vpop.f32.mrf.mxu1 }
 0x1a5   : > { %v4637_v43 = vpop.f32.mrf.mxu0  ;;  %v2392_v1 = vadd.f32 %v4603_v20, %v6207_v14 }
 0x1a6   : > { %v6303_v27 = vadd.f32 %v4637_v43, %v2388_v28  ;;  %v2271_v51 = vpop.f32.mrf.mxu1 }
 0x1a7   : > { %v2694_v32 = vpop.f32.mrf.mxu0  ;;  %v2390_v50 = vadd.f32 %v2271_v51, %v6210_v7 }
 0x1a8   : > { %v6306_v5 = vadd.f32 %v2694_v32, %v2386_v42  ;;  %v4604_v54 = vpop.f32.mrf.mxu1 }
 0x1a9   : > { %v4638_v9 = vpop.f32.mrf.mxu0  ;;  %v2393_v41 = vadd.f32 %v4604_v54, %v6213_v57 }
 0x1aa   : > { %v6309_v60 = vadd.f32 %v4638_v9, %v2389_v47  ;;  %v2274_v62 = vpop.f32.mrf.mxu1 }
 0x1ab   : > { %v2697_v38 = vpop.f32.mrf.mxu0  ;;  %v2391_v52 = vadd.f32 %v2274_v62, %v6216_v37 }
 0x1ac   : > { %v6312_v31 = vadd.f32 %v2697_v38, %v2387_v11  ;;  %v4607_v14 = vpop.f32.mrf.mxu1 }
 0x1ad   : > { %v4641_v23 = vpop.f32.mrf.mxu0  ;;  %v2396_v49 = vadd.f32 %v4607_v14, %v6219_v63 }
 0x1ae   : > { %v6315_v46 = vadd.f32 %v4641_v23, %v2392_v1  ;;  %v2287_v7 = vpop.f32.mrf.mxu1 }
 0x1af   : > { %v2710_v53 = vpop.f32.mrf.mxu0  ;;  %v2394_v26 = vadd.f32 %v2287_v7, %v6222_v18 }
 0x1b0   : > { %v6318_v13 = vadd.f32 %v2710_v53, %v2390_v50  ;;  %v4608_v57 = vpop.f32.mrf.mxu1 }
 0x1b1   : > { %v4642_v36 = vpop.f32.mrf.mxu0  ;;  %v2397_v10 = vadd.f32 %v4608_v57, %v6225_v39 }
 0x1b2   : > { %v6321_v28 = vadd.f32 %v4642_v36, %v2393_v41  ;;  %v2290_v37 = vpop.f32.mrf.mxu1 }
 0x1b3   : > { %v2713_v35 = vpop.f32.mrf.mxu0  ;;  %v2395_v3 = vadd.f32 %v2290_v37, %v6228_v55 }
 0x1b4   : > { %v6324_v42 = vadd.f32 %v2713_v35, %v2391_v52  ;;  %v4611_v63 = vpop.f32.mrf.mxu1 }
 0x1b5   : > { %v4645_v44 = vpop.f32.mrf.mxu0  ;;  %v2400_v43 = vadd.f32 %v4611_v63, %v6231_v30 }
 0x1b6   : > { %v6327_v47 = vadd.f32 %v4645_v44, %v2396_v49  ;;  %v2303_v18 = vpop.f32.mrf.mxu1 }
 0x1b7   : > { %v2726_v15 = vpop.f32.mrf.mxu0  ;;  %v2398_v32 = vadd.f32 %v2303_v18, %v6234_v40 }
 0x1b8   : > { %v6330_v11 = vadd.f32 %v2726_v15, %v2394_v26  ;;  %v4612_v39 = vpop.f32.mrf.mxu1 }
 0x1b9   : > { %v4646_v20 = vpop.f32.mrf.mxu0  ;;  %v2401_v9 = vadd.f32 %v4612_v39, %v6237_v21 }
 0x1ba   : > { %v6333_v1 = vadd.f32 %v4646_v20, %v2397_v10  ;;  %v2306_v55 = vpop.f32.mrf.mxu1 }
 0x1bb   : > { %v2729_v51 = vpop.f32.mrf.mxu0  ;;  %v2399_v38 = vadd.f32 %v2306_v55, %v6240_v2 }
 0x1bc   : > { %v6336_v50 = vadd.f32 %v2729_v51, %v2395_v3  ;;  %v4615_v30 = vpop.f32.mrf.mxu1 }
 0x1bd   : > { %v4649_v54 = vpop.f32.mrf.mxu0  ;;  %v2404_v23 = vadd.f32 %v4615_v30, %v6243_v58 }
 0x1be   : > { %v6339_v41 = vadd.f32 %v4649_v54, %v2400_v43  ;;  %v2319_v40 = vpop.f32.mrf.mxu1 }
 0x1bf   : > { %v2742_v62 = vpop.f32.mrf.mxu0  ;;  %v2402_v53 = vadd.f32 %v2319_v40, %v6246_v8 }
 0x1c0   : > { %v6342_v52 = vadd.f32 %v2742_v62, %v2398_v32  ;;  %v4616_v21 = vpop.f32.mrf.mxu1 }
 0x1c1   : > { %v4650_v14 = vpop.f32.mrf.mxu0  ;;  %v2405_v36 = vadd.f32 %v4616_v21, %v6249_v4 }
 0x1c2   : > { %v6345_v49 = vadd.f32 %v4650_v14, %v2401_v9  ;;  %v2322_v2 = vpop.f32.mrf.mxu1 }
 0x1c3   : > { %v2745_v7 = vpop.f32.mrf.mxu0  ;;  %v2403_v35 = vadd.f32 %v2322_v2, %v6252_v0 }
 0x1c4   : > { %v6348_v26 = vadd.f32 %v2745_v7, %v2399_v38  ;;  %v4619_v58 = vpop.f32.mrf.mxu1 }
 0x1c5   : > { %v4653_v57 = vpop.f32.mrf.mxu0  ;;  %v2408_v44 = vadd.f32 %v4619_v58, %v6255_v59 }
 0x1c6   : > { %v6351_v10 = vadd.f32 %v4653_v57, %v2404_v23  ;;  %v2335_v8 = vpop.f32.mrf.mxu1 }
 0x1c7   : > { %v2758_v37 = vpop.f32.mrf.mxu0  ;;  %v2406_v15 = vadd.f32 %v2335_v8, %v6258_v48 }
 0x1c8   : > { %v6354_v3 = vadd.f32 %v2758_v37, %v2402_v53  ;;  %v4620_v4 = vpop.f32.mrf.mxu1 }
 0x1c9   : > { %v4654_v63 = vpop.f32.mrf.mxu0  ;;  %v2409_v20 = vadd.f32 %v4620_v4, %v6261_v19 }
 0x1ca   : > { %v6357_v43 = vadd.f32 %v4654_v63, %v2405_v36  ;;  %v2338_v0 = vpop.f32.mrf.mxu1 }
 0x1cb   : > { %v2761_v18 = vpop.f32.mrf.mxu0  ;;  %v2407_v51 = vadd.f32 %v2338_v0, %v6264_v29 }
 0x1cc   : > { %v6360_v32 = vadd.f32 %v2761_v18, %v2403_v35  ;;  %v4623_v59 = vpop.f32.mrf.mxu1 }
 0x1cd   : > { %v4657_v39 = vpop.f32.mrf.mxu0  ;;  %v2412_v54 = vadd.f32 %v4623_v59, %v6267_v16 }
 0x1ce   : > { %v6363_v9 = vadd.f32 %v4657_v39, %v2408_v44  ;;  %v2351_v48 = vpop.f32.mrf.mxu1 }
 0x1cf   : > { %v2774_v55 = vpop.f32.mrf.mxu0  ;;  %v2410_v62 = vadd.f32 %v2351_v48, %v6270_v25 }
 0x1d0   : > { %v6366_v38 = vadd.f32 %v2774_v55, %v2406_v15  ;;  %v4624_v19 = vpop.f32.mrf.mxu1 }
 0x1d1   : > { %v4658_v30 = vpop.f32.mrf.mxu0  ;;  %v2413_v14 = vadd.f32 %v4624_v19, %v6273_v61 }
 0x1d2   : > { %v6369_v23 = vadd.f32 %v4658_v30, %v2409_v20  ;;  %v2354_v29 = vpop.f32.mrf.mxu1 }
 0x1d3   : > { %v2777_v40 = vpop.f32.mrf.mxu0  ;;  %v2411_v7 = vadd.f32 %v2354_v29, %v6276_v6 }
 0x1d4   : > { %v6372_v53 = vadd.f32 %v2777_v40, %v2407_v51  ;;  %v4627_v16 = vpop.f32.mrf.mxu1 }
 0x1d5   : > { %v4661_v21 = vpop.f32.mrf.mxu0  ;;  %v2416_v57 = vadd.f32 %v4627_v16, %v6279_v22 }
 0x1d6   : > { %v6375_v36 = vadd.f32 %v4661_v21, %v2412_v54  ;;  %v2367_v25 = vpop.f32.mrf.mxu1 }
 0x1d7   : > { %v2790_v2 = vpop.f32.mrf.mxu0  ;;  %v2414_v37 = vadd.f32 %v2367_v25, %v6282_v24 }
 0x1d8   : > { %v6378_v35 = vadd.f32 %v2790_v2, %v2410_v62  ;;  %v4628_v61 = vpop.f32.mrf.mxu1 }
 0x1d9   : > { %v4662_v58 = vpop.f32.mrf.mxu0  ;;  %v2417_v63 = vadd.f32 %v4628_v61, %v6285_v45 }
 0x1da   : > { %v6381_v44 = vadd.f32 %v4662_v58, %v2413_v14  ;;  %v2370_v6 = vpop.f32.mrf.mxu1 }
 0x1db   : > { %v2793_v8 = vpop.f32.mrf.mxu0  ;;  %v2415_v18 = vadd.f32 %v2370_v6, %v6288_v34  ;;  %v6399_v34 = vld [vmem:[%s6728_s2] ss:$0 sm:$0xff] }
 0x1dc   : > { %v6384_v15 = vadd.f32 %v2793_v8, %v2411_v7  ;;  %v4671_v22 = vpop.f32.mrf.mxu1 }
 0x1dd   : > { %v4665_v4 = vpop.f32.mrf.mxu0  ;;  %v3270_v45 = vadd.f32 %v4671_v22, %v6291_v56 }
 0x1de   : > { %v6387_v20 = vadd.f32 %v4665_v4, %v2416_v57  ;;  %v3125_v51 = vpop.f32.mrf.mxu1 }
 0x1df   : > { %v2806_v0 = vpop.f32.mrf.mxu0  ;;  %v3268_v19 = vadd.f32 %v3125_v51, %v6294_v33 }
 0x1e0   : > { %v6389_v39 = vadd.f32 %v2806_v0, %v2414_v37  ;;  %v4672_v55 = vpop.f32.mrf.mxu1 }
 0x1e1   : > { %v4666_v24 = vpop.f32.mrf.mxu0  ;;  %v3271_v21 = vadd.f32 %v4672_v55, %v6297_v17 }
 0x1e2   : > { %v6391_v59 = vadd.f32 %v4666_v24, %v2417_v63  ;;  %v3128_v30 = vpop.f32.mrf.mxu1 }
 0x1e3   : > { %v2809_v54 = vpop.f32.mrf.mxu0  ;;  %v3269_v37 = vadd.f32 %v3128_v30, %v6300_v12 }
 0x1e4   : > { %v6394_v48 = vadd.f32 %v2809_v54, %v2415_v18  ;;  %v4675_v14 = vpop.f32.mrf.mxu1 }
 0x1e5   : > { %v4709_v62 = vpop.f32.mrf.mxu0  ;;  %v3274_v6 = vadd.f32 %v4675_v14, %v6303_v27 }
 0x1e6   : > { %v3584_v40 = vadd.f32 %v4709_v62, %v3270_v45  ;;  %v3141_v16 = vpop.f32.mrf.mxu1 }
 0x1e7   : > { %v3439_v29 = vpop.f32.mrf.mxu0  ;;  %v3272_v0 = vadd.f32 %v3141_v16, %v6306_v5 }
 0x1e8   : > { %v6404_v7 = vadd.f32 %v6399_v34, %v3584_v40  ;;  %v3582_v56 = vadd.f32 %v3439_v29, %v3268_v19  ;;  %v4676_v33 = vpop.f32.mrf.mxu1 }
 0x1e9   : > { %v4710_v2 = vpop.f32.mrf.mxu0  ;;  %v3275_v30 = vadd.f32 %v4676_v33, %v6309_v60 }
 0x1ea   : > { %v3663_v57 = vsub.f32 0.0, %v6404_v7  ;;  %v6408_v25 = vadd.f32 %v6399_v34, %v3582_v56  ;;  %v3585_v58 = vadd.f32 %v4710_v2, %v3271_v21  ;;  %v3144_v4 = vpop.f32.mrf.mxu1 }
 0x1eb   : > { %v3442_v61 = vpop.f32.mrf.mxu0  ;;  %v3273_v29 = vadd.f32 %v3144_v4, %v6312_v31 }
 0x1ec   : > { %v3701_v8 = vmul.f32 1.442695, %v3663_v57  ;;  %v3661_v63 = vsub.f32 0.0, %v6408_v25  ;;  %v6413_v17 = vadd.f32 %v6399_v34, %v3585_v58  ;;  %v3583_v18 = vadd.f32 %v3442_v61, %v3269_v37  ;;  %v4679_v55 = vpop.f32.mrf.mxu1 }
 0x1ed   : > { %v4713_v22 = vpop.f32.mrf.mxu0  ;;  %v3278_v61 = vadd.f32 %v4679_v55, %v6315_v46 }
 0x1ee   : > { %4861 = vpow2.f32 %v3701_v8  ;;  %v3697_v51 = vmul.f32 1.442695, %v3661_v63  ;;  %v3664_v24 = vsub.f32 0.0, %v6413_v17  ;;  %v6419_v12 = vadd.f32 %v6399_v34, %v3583_v18  ;;  %v3157_v5 = vpop.f32.mrf.mxu1 }
 0x1ef   : > { %v3588_v54 = vadd.f32 %v4713_v22, %v3274_v6  ;;  %v3455_v45 = vpop.f32.mrf.mxu0  ;;  %v3276_v22 = vadd.f32 %v3157_v5, %v6318_v13 }
 0x1f0   : > { %4863 = vpow2.f32 %v3697_v51  ;;  %v3703_v62 = vmul.f32 1.442695, %v3664_v24  ;;  %v3586_v27 = vadd.f32 %v3455_v45, %v3272_v0  ;;  %v3662_v19 = vsub.f32 0.0, %v6419_v12  ;;  %v4680_v60 = vpop.f32.mrf.mxu1 }
 0x1f1   : > { %v6424_v40 = vadd.f32 %v6399_v34, %v3588_v54  ;;  %v4714_v14 = vpop.f32.mrf.mxu0  ;;  %v3279_v54 = vadd.f32 %v4680_v60, %v6321_v28 }
 0x1f2   : > { %4865 = vpow2.f32 %v3703_v62  ;;  %v6428_v21 = vadd.f32 %v6399_v34, %v3586_v27  ;;  %v3589_v56 = vadd.f32 %v4714_v14, %v3275_v30  ;;  %v3699_v16 = vmul.f32 1.442695, %v3662_v19  ;;  %v3160_v31 = vpop.f32.mrf.mxu1 }
 0x1f3   : > { %v3667_v2 = vsub.f32 0.0, %v6424_v40  ;;  %v3458_v57 = vpop.f32.mrf.mxu0  ;;  %v3277_v13 = vadd.f32 %v3160_v31, %v6324_v42 }
 0x1f4   : > { %v3665_v58 = vsub.f32 0.0, %v6428_v21  ;;  %v6433_v37 = vadd.f32 %v6399_v34, %v3589_v56  ;;  %v3587_v33 = vadd.f32 %v3458_v57, %v3273_v29  ;;  %4867 = vpow2.f32 %v3699_v16  ;;  %v4683_v0 = vpop.f32.mrf.mxu1 }
 0x1f5   : > { %v3709_v8 = vmul.f32 1.442695, %v3667_v2  ;;  %v4717_v63 = vpop.f32.mrf.mxu0 }
 0x1f6   : > { %v3705_v6 = vmul.f32 1.442695, %v3665_v58  ;;  %v3668_v4 = vsub.f32 0.0, %v6433_v37  ;;  %v6438_v18 = vadd.f32 %v6399_v34, %v3587_v33  ;;  %v3592_v51 = vadd.f32 %v4717_v63, %v3278_v61  ;;  %v3173_v30 = vpop.f32.mrf.mxu1 }
 0x1f7   : > { %4869 = vpow2.f32 %v3709_v8  ;;  %v3471_v24 = vpop.f32.mrf.mxu0  ;;  %v3282_v58 = vadd.f32 %v4683_v0, %v6327_v47 }
 0x1f8   : > { %4871 = vpow2.f32 %v3705_v6  ;;  %v3711_v45 = vmul.f32 1.442695, %v3668_v4  ;;  %v3666_v46 = vsub.f32 0.0, %v6438_v18  ;;  %v6444_v55 = vadd.f32 %v6399_v34, %v3592_v51  ;;  %v4684_v28 = vpop.f32.mrf.mxu1 }
 0x1f9   : > { %v3590_v62 = vadd.f32 %v3471_v24, %v3276_v22  ;;  %v4718_v27 = vpop.f32.mrf.mxu0  ;;  %v3280_v6 = vadd.f32 %v3173_v30, %v6330_v11 }
 0x1fa   : > { %4873 = vpow2.f32 %v3711_v45  ;;  %v3707_v19 = vmul.f32 1.442695, %v3666_v46  ;;  %v3593_v14 = vadd.f32 %v4718_v27, %v3279_v54  ;;  %v3671_v5 = vsub.f32 0.0, %v6444_v55  ;;  %v3176_v8 = vpop.f32.mrf.mxu1 }
 0x1fb   : > { %v4862_v29 = vpop.eup %4861  ;;  %v6449_v56 = vadd.f32 %v6399_v34, %v3590_v62  ;;  %v3474_v16 = vpop.f32.mrf.mxu0  ;;  %v3283_v46 = vadd.f32 %v4684_v28, %v6333_v1 }
 0x1fc   : > { %v3771_v2 = vadd.f32 1.0, %v4862_v29  ;;  %4875 = vpow2.f32 %v3707_v19  ;;  %v6452_v60 = vadd.f32 %v6399_v34, %v3593_v14  ;;  %v3717_v33 = vmul.f32 1.442695, %v3671_v5  ;;  %v4687_v54 = vpop.f32.mrf.mxu1 }
 0x1fd   : > { %v4864_v57 = vpop.eup %4863  ;;  %v3669_v61 = vsub.f32 0.0, %v6449_v56  ;;  %v3591_v42 = vadd.f32 %v3474_v16, %v3277_v13  ;;  %v4721_v31 = vpop.f32.mrf.mxu0  ;;  %v3281_v13 = vadd.f32 %v3176_v8, %v6336_v50  ;;  %v3286_v5 = vadd.f32 %v4687_v54, %v6339_v41 }
 0x1fe   : > { %4877 = vrcp.f32 %v3771_v2  ;;  %v3769_v63 = vadd.f32 1.0, %v4864_v57  ;;  %v3672_v4 = vsub.f32 0.0, %v6452_v60  ;;  %v3596_v47 = vadd.f32 %v4721_v31, %v3282_v58  ;;  %v3189_v30 = vpop.f32.mrf.mxu1 }
 0x1ff   : > { %v4866_v22 = vpop.eup %4865  ;;  %4879 = vpow2.f32 %v3717_v33  ;;  %v3713_v51 = vmul.f32 1.442695, %v3669_v61  ;;  %v6459_v24 = vadd.f32 %v6399_v34, %v3591_v42  ;;  %v3487_v0 = vpop.f32.mrf.mxu0  ;;  %v3284_v61 = vadd.f32 %v3189_v30, %v6342_v52 }
 0x200   : > { %4881 = vrcp.f32 %v3769_v63  ;;  %v3772_v45 = vadd.f32 1.0, %v4866_v22  ;;  %v3719_v62 = vmul.f32 1.442695, %v3672_v4  ;;  %v6464_v11 = vadd.f32 %v6399_v34, %v3596_v47  ;;  %v4688_v57 = vpop.f32.mrf.mxu1 }
 0x201   : > { %4883 = vpow2.f32 %v3713_v51  ;;  %v3670_v27 = vsub.f32 0.0, %v6459_v24  ;;  %v3594_v19 = vadd.f32 %v3487_v0, %v3280_v6  ;;  %v4722_v14 = vpop.f32.mrf.mxu0  ;;  %v4868_v29 = vpop.eup %4867  ;;  %v3287_v6 = vadd.f32 %v4688_v57, %v6345_v49 }
 0x202   : > { %4885 = vrcp.f32 %v3772_v45  ;;  %v3597_v16 = vadd.f32 %v4722_v14, %v3283_v46  ;;  %v3770_v2 = vadd.f32 1.0, %v4868_v29  ;;  %v3675_v28 = vsub.f32 0.0, %v6464_v11  ;;  %v3192_v4 = vpop.f32.mrf.mxu1 }
 0x203   : > { %4887 = vpow2.f32 %v3719_v62  ;;  %v3715_v1 = vmul.f32 1.442695, %v3670_v27  ;;  %v3490_v58 = vpop.f32.mrf.mxu0  ;;  %v6472_v42 = vadd.f32 %v6399_v34, %v3594_v19  ;;  %v3285_v0 = vadd.f32 %v3192_v4, %v6348_v26 }
 0x204   : > { %v4870_v33 = vpop.eup %4869  ;;  %v6475_v50 = vadd.f32 %v6399_v34, %v3597_v16  ;;  %v3595_v41 = vadd.f32 %v3490_v58, %v3281_v13  ;;  %4889 = vrcp.f32 %v3770_v2  ;;  %v3725_v63 = vmul.f32 1.442695, %v3675_v28  ;;  %v4691_v46 = vpop.f32.mrf.mxu1 }
 0x205   : > { %v4872_v8 = vpop.eup %4871  ;;  %v3775_v31 = vadd.f32 1.0, %v4870_v33  ;;  %v4725_v22 = vpop.f32.mrf.mxu0  ;;  %4891 = vpow2.f32 %v3715_v1  ;;  %v3673_v52 = vsub.f32 0.0, %v6472_v42  ;;  %v3290_v13 = vadd.f32 %v4691_v46, %v6351_v10 }
 0x206   : > { %v3773_v51 = vadd.f32 1.0, %v4872_v8  ;;  %v3676_v54 = vsub.f32 0.0, %v6475_v50  ;;  %v6486_v45 = vadd.f32 %v6399_v34, %v3595_v41  ;;  %v3600_v49 = vadd.f32 %v4725_v22, %v3286_v5  ;;  %v3205_v26 = vpop.f32.mrf.mxu1 }
 0x207   : > { %v4874_v47 = vpop.eup %4873  ;;  %4893 = vrcp.f32 %v3775_v31  ;;  %v3503_v62 = vpop.f32.mrf.mxu0  ;;  %v3721_v30 = vmul.f32 1.442695, %v3673_v52  ;;  %v3288_v5 = vadd.f32 %v3205_v26, %v6354_v3 }
 0x208   : > { %4895 = vrcp.f32 %v3773_v51  ;;  %v3776_v27 = vadd.f32 1.0, %v4874_v47  ;;  %v3727_v19 = vmul.f32 1.442695, %v3676_v54  ;;  %v3674_v29 = vsub.f32 0.0, %v6486_v45  ;;  %v4692_v41 = vpop.f32.mrf.mxu1 }
 0x209   : > { %v4876_v14 = vpop.eup %4875  ;;  %4897 = vpow2.f32 %v3725_v63  ;;  %v6491_v16 = vadd.f32 %v6399_v34, %v3600_v49  ;;  %v4726_v2 = vpop.f32.mrf.mxu0  ;;  %v3598_v28 = vadd.f32 %v3503_v62, %v3284_v61  ;;  %v3291_v22 = vadd.f32 %v4692_v41, %v6357_v43 }
 0x20a   : > { %4899 = vrcp.f32 %v3776_v27  ;;  %v3774_v1 = vadd.f32 1.0, %v4876_v14  ;;  %v3723_v58 = vmul.f32 1.442695, %v3674_v29  ;;  %v3601_v8 = vadd.f32 %v4726_v2, %v3287_v6  ;;  %v3208_v54 = vpop.f32.mrf.mxu1 }
 0x20b   : > { %v4878_v57 = vpop.eup %4877  ;;  %4901 = vpow2.f32 %v3721_v30  ;;  %v3679_v33 = vsub.f32 0.0, %v6491_v16  ;;  %v3506_v31 = vpop.f32.mrf.mxu0  ;;  %v6497_v4 = vadd.f32 %v6399_v34, %v3598_v28  ;;  %v6510_v46 = vadd.f32 %v3208_v54, %v6360_v32 }
 0x20c   : > { %v4880_v10 = vpop.eup %4879  ;;  %v3843_v63 = vmul.f32 %v4878_v57, %v6404_v7  ;;  %4903 = vrcp.f32 %v3774_v1  ;;  %v6501_v52 = vadd.f32 %v6399_v34, %v3601_v8  ;;  %v3599_v30 = vadd.f32 %v3506_v31, %v3285_v0 }
 0x20d   : > { %v4882_v3 = vpop.eup %4881  ;;  %v3779_v61 = vadd.f32 1.0, %v4880_v10  ;;  %4905 = vpow2.f32 %v3727_v19  ;;  %v3733_v51 = vmul.f32 1.442695, %v3679_v33  ;;  %v4729_v47 = vpop.f32.mrf.mxu0  ;;  %v3677_v43 = vsub.f32 0.0, %v6497_v4 }
 0x20e   : > { %v4884_v6 = vpop.eup %4883  ;;  %3879 = vst [vmem:[%s6504_s6 + $0x10] sm:$0xff] %v3843_v63  ;;  %v3841_v7 = vmul.f32 %v4882_v3, %v6408_v25  ;;  %4907 = vpow2.f32 %v3723_v58  ;;  %v3680_v27 = vsub.f32 0.0, %v6501_v52  ;;  %v4695_v19 = vpop.f32.mrf.mxu1  ;;  %v6519_v28 = vadd.f32 %v6399_v34, %v3599_v30 }
 0x20f   : > { %v4886_v49 = vpop.eup %4885  ;;  %4909 = vrcp.f32 %v3779_v61  ;;  %v3777_v62 = vadd.f32 1.0, %v4884_v6  ;;  %v3519_v14 = vpop.f32.mrf.mxu0  ;;  %v3729_v25 = vmul.f32 1.442695, %v3677_v43  ;;  %v6516_v2 = vadd.f32 %v4695_v19, %v6363_v9 }
 0x210   : > { %v4888_v29 = vpop.eup %4887  ;;  %3877 = vst [vmem:[%s6504_s6] sm:$0xff] %v3841_v7  ;;  %v3844_v26 = vmul.f32 %v4886_v49, %v6413_v17  ;;  %4911 = vpow2.f32 %v3733_v51  ;;  %v3735_v1 = vmul.f32 1.442695, %v3680_v27  ;;  %v3221_v57 = vpop.f32.mrf.mxu1  ;;  %v3604_v33 = vadd.f32 %v4729_v47, %v3290_v13 }
 0x211   : > { %4913 = vrcp.f32 %v3777_v62  ;;  %v3780_v32 = vadd.f32 1.0, %v4888_v29  ;;  %v4730_v0 = vpop.f32.mrf.mxu0  ;;  %v4890_v58 = vpop.eup %4889  ;;  %v3292_v17 = vadd.f32 %v3221_v57, %v6366_v38  ;;  %v3602_v41 = vadd.f32 %v3519_v14, %v3288_v5 }
 0x212   : > { %3880 = vst [vmem:[%s6504_s6 + $0x18] sm:$0xff] %v3844_v26  ;;  %4915 = vpow2.f32 %v3729_v25  ;;  %v4892_v8 = vpop.eup %4891  ;;  %v3842_v9 = vmul.f32 %v4890_v58, %v6419_v12  ;;  %v3678_v31 = vsub.f32 0.0, %v6519_v28  ;;  %v4696_v10 = vpop.f32.mrf.mxu1  ;;  %v3605_v63 = vadd.f32 %v4730_v0, %v3291_v22 }
 0x213   : > { %4917 = vrcp.f32 %v3780_v32  ;;  %v3522_v3 = vpop.f32.mrf.mxu0  ;;  %v3778_v51 = vadd.f32 1.0, %v4892_v8  ;;  %v6526_v54 = vadd.f32 %v6399_v34, %v3604_v33  ;;  %v6529_v13 = vadd.f32 %v6399_v34, %v3602_v41 }
 0x214   : > { %v4894_v61 = vpop.eup %4893  ;;  %4919 = vpow2.f32 %v3735_v1  ;;  %3878 = vst [vmem:[%s6504_s6 + $0x8] sm:$0xff] %v3842_v9  ;;  %v3731_v5 = vmul.f32 1.442695, %v3678_v31  ;;  %v6534_v47 = vadd.f32 %v4696_v10, %v6369_v23  ;;  %v6537_v22 = vadd.f32 %v6399_v34, %v3605_v63  ;;  %v3224_v6 = vpop.f32.mrf.mxu1 }
 0x215   : > { %v4896_v38 = vpop.eup %4895  ;;  %v3847_v12 = vmul.f32 %v4894_v61, %v6424_v40  ;;  %v4733_v7 = vpop.f32.mrf.mxu0  ;;  %4921 = vrcp.f32 %v3778_v51  ;;  %v3683_v62 = vsub.f32 0.0, %v6526_v54  ;;  %v3681_v27 = vsub.f32 0.0, %v6529_v13 }
 0x216   : > { %v4898_v43 = vpop.eup %4897  ;;  %v3845_v49 = vmul.f32 %v4896_v38, %v6428_v21  ;;  %4923 = vpow2.f32 %v3731_v5  ;;  %v3684_v23 = vsub.f32 0.0, %v6537_v22  ;;  %v6545_v19 = vadd.f32 %v3224_v6, %v6372_v53  ;;  %v4699_v14 = vpop.f32.mrf.mxu1 }
 0x217   : > { %v4900_v30 = vpop.eup %4899  ;;  %3883 = vst [vmem:[%s6504_s6 + $0x30] sm:$0xff] %v3847_v12  ;;  %v3783_v40 = vadd.f32 1.0, %v4898_v43  ;;  %v3535_v29 = vpop.f32.mrf.mxu0  ;;  %v3741_v25 = vmul.f32 1.442695, %v3683_v62  ;;  %v3737_v32 = vmul.f32 1.442695, %v3681_v27  ;;  %v3603_v1 = vadd.f32 %v3522_v3, %v6510_v46 }
 0x218   : > { %v4902_v26 = vpop.eup %4901  ;;  %3881 = vst [vmem:[%s6504_s6 + $0x20] sm:$0xff] %v3845_v49  ;;  %v3848_v21 = vmul.f32 %v4900_v30, %v6433_v37  ;;  %v3743_v58 = vmul.f32 1.442695, %v3684_v23  ;;  %v6551_v33 = vadd.f32 %v4699_v14, %v6375_v36  ;;  %v3237_v53 = vpop.f32.mrf.mxu1  ;;  %v3608_v46 = vadd.f32 %v4733_v7, %v6516_v2 }
 0x219   : > { %v4904_v57 = vpop.eup %4903  ;;  %4925 = vrcp.f32 %v3783_v40  ;;  %v3781_v0 = vadd.f32 1.0, %v4902_v26  ;;  %v4734_v41 = vpop.f32.mrf.mxu0  ;;  %v6556_v37 = vadd.f32 %v6399_v34, %v3603_v1  ;;  %v3296_v63 = vadd.f32 %v3237_v53, %v6378_v35 }
 0x21a   : > { %v4906_v8 = vpop.eup %4905  ;;  %3884 = vst [vmem:[%s6504_s6 + $0x38] sm:$0xff] %v3848_v21  ;;  %v3846_v9 = vmul.f32 %v4904_v57, %v6438_v18  ;;  %4927 = vpow2.f32 %v3741_v25  ;;  %v3606_v36 = vadd.f32 %v3535_v29, %v3292_v17  ;;  %v4700_v3 = vpop.f32.mrf.mxu1  ;;  %v6563_v12 = vadd.f32 %v6399_v34, %v3608_v46 }
 0x21b   : > { %v4908_v31 = vpop.eup %4907  ;;  %4929 = vrcp.f32 %v3781_v0  ;;  %v3784_v10 = vadd.f32 1.0, %v4906_v8  ;;  %v3538_v61 = vpop.f32.mrf.mxu0  ;;  %v3682_v18 = vsub.f32 0.0, %v6556_v37  ;;  %v3299_v35 = vadd.f32 %v4700_v3, %v6381_v44 }
 0x21c   : > { %v4910_v51 = vpop.eup %4909  ;;  %3882 = vst [vmem:[%s6504_s6 + $0x28] sm:$0xff] %v3846_v9  ;;  %v3782_v38 = vadd.f32 1.0, %v4908_v31  ;;  %4931 = vpow2.f32 %v3737_v32  ;;  %v6567_v6 = vadd.f32 %v6399_v34, %v3606_v36  ;;  %v3240_v17 = vpop.f32.mrf.mxu1  ;;  %v3687_v27 = vsub.f32 0.0, %v6563_v12 }
 0x21d   : > { %v4912_v5 = vpop.eup %4911  ;;  %v3851_v2 = vmul.f32 %v4910_v51, %v6444_v55  ;;  %4933 = vrcp.f32 %v3784_v10  ;;  %v4737_v7 = vpop.f32.mrf.mxu0  ;;  %v3739_v62 = vmul.f32 1.442695, %v3682_v18  ;;  %v3609_v23 = vadd.f32 %v4734_v41, %v6534_v47 }
 0x21e   : > { %v4914_v43 = vpop.eup %4913  ;;  %4935 = vrcp.f32 %v3782_v38  ;;  %v3787_v49 = vadd.f32 1.0, %v4912_v5  ;;  %v3685_v55 = vsub.f32 0.0, %v6567_v6  ;;  %v4703_v14 = vpop.f32.mrf.mxu1  ;;  %v3749_v21 = vmul.f32 1.442695, %v3687_v27 }
 0x21f   : > { %v4916_v30 = vpop.eup %4915  ;;  %3887 = vst [vmem:[%s6504_s6 + $0x50] sm:$0xff] %v3851_v2  ;;  %v3849_v40 = vmul.f32 %v4914_v43, %v6449_v56  ;;  %4937 = vpow2.f32 %v3743_v58  ;;  %v3551_v44 = vpop.f32.mrf.mxu0  ;;  %v3297_v25 = vadd.f32 %v3240_v17, %v6384_v15  ;;  %v6579_v57 = vadd.f32 %v6399_v34, %v3609_v23 }
 0x220   : > { %v4918_v29 = vpop.eup %4917  ;;  %4939 = vrcp.f32 %v3787_v49  ;;  %v3785_v26 = vadd.f32 1.0, %v4916_v30  ;;  %v3745_v56 = vmul.f32 1.442695, %v3685_v55  ;;  %v3253_v0 = vpop.f32.mrf.mxu1  ;;  %v3607_v53 = vadd.f32 %v3538_v61, %v6545_v19 }
 0x221   : > { %v4920_v32 = vpop.eup %4919  ;;  %3885 = vst [vmem:[%s6504_s6 + $0x40] sm:$0xff] %v3849_v40  ;;  %v3852_v1 = vmul.f32 %v4918_v29, %v6452_v60  ;;  %4941 = vpow2.f32 %v3739_v62  ;;  %v4738_v47 = vpop.f32.mrf.mxu0  ;;  %v3302_v41 = vadd.f32 %v4703_v14, %v6387_v20  ;;  %v3688_v15 = vsub.f32 0.0, %v6579_v57 }
 0x222   : > { %4943 = vrcp.f32 %v3785_v26  ;;  %v3788_v58 = vadd.f32 1.0, %v4920_v32  ;;  %v4922_v8 = vpop.eup %4921  ;;  %v3612_v60 = vadd.f32 %v4737_v7, %v6551_v33  ;;  %v3300_v9 = vadd.f32 %v3253_v0, %v6389_v39  ;;  %v4704_v46 = vpop.f32.mrf.mxu1 }
 0x223   : > { %3888 = vst [vmem:[%s6504_s6 + $0x58] sm:$0xff] %v3852_v1  ;;  %4945 = vpow2.f32 %v3749_v21  ;;  %v3554_v31 = vpop.f32.mrf.mxu0  ;;  %v4924_v10 = vpop.eup %4923  ;;  %v3850_v36 = vmul.f32 %v4922_v8, %v6459_v24  ;;  %v6589_v19 = vadd.f32 %v6399_v34, %v3607_v53  ;;  %v3610_v20 = vadd.f32 %v3551_v44, %v3296_v63 }
 0x224   : > { %4947 = vrcp.f32 %v3788_v58  ;;  %v3786_v3 = vadd.f32 1.0, %v4924_v10  ;;  %v3751_v61 = vmul.f32 1.442695, %v3688_v15  ;;  %v6592_v51 = vadd.f32 %v6399_v34, %v3612_v60  ;;  %v3256_v33 = vpop.f32.mrf.mxu1 }
 0x225   : > { %4949 = vpow2.f32 %v3745_v56  ;;  %v4741_v38 = vpop.f32.mrf.mxu0  ;;  %3886 = vst [vmem:[%s6504_s6 + $0x48] sm:$0xff] %v3850_v36  ;;  %v3686_v39 = vsub.f32 0.0, %v6589_v19  ;;  %v6597_v24 = vadd.f32 %v6399_v34, %v3610_v20  ;;  %v3303_v5 = vadd.f32 %v4704_v46, %v6391_v59 }
 0x226   : > { %v4926_v18 = vpop.eup %4925  ;;  %v3613_v2 = vadd.f32 %v4738_v47, %v3299_v35  ;;  %4951 = vrcp.f32 %v3786_v3  ;;  %v3691_v7 = vsub.f32 0.0, %v6592_v51  ;;  %v3301_v43 = vadd.f32 %v3256_v33, %v6394_v48 }
 0x227   : > { %v4928_v63 = vpop.eup %4927  ;;  %v3855_v17 = vmul.f32 %v4926_v18, %v6464_v11  ;;  %v3567_v49 = vpop.f32.mrf.mxu0  ;;  %4953 = vpow2.f32 %v3751_v61  ;;  %v3747_v30 = vmul.f32 1.442695, %v3686_v39  ;;  %v3689_v40 = vsub.f32 0.0, %v6597_v24 }
 0x228   : > { %v4930_v62 = vpop.eup %4929  ;;  %v3791_v27 = vadd.f32 1.0, %v4928_v63  ;;  %v3757_v35 = vmul.f32 1.442695, %v3691_v7  ;;  %v6607_v11 = vadd.f32 %v6399_v34, %v3613_v2  ;;  %v3611_v23 = vadd.f32 %v3554_v31, %v3297_v25 }
 0x229   : > { %v4932_v55 = vpop.eup %4931  ;;  %3891 = vst [vmem:[%s6504_s6 + $0x70] sm:$0xff] %v3855_v17  ;;  %v3853_v59 = vmul.f32 %v4930_v62, %v6472_v42  ;;  %v3753_v44 = vmul.f32 1.442695, %v3689_v40  ;;  %v3616_v29 = vadd.f32 %v4741_v38, %v3302_v41  ;;  %v4742_v26 = vpop.f32.mrf.mxu0  ;;  %v3614_v47 = vadd.f32 %v3567_v49, %v3300_v9 }
 0x22a   : > { %v4934_v14 = vpop.eup %4933  ;;  %4955 = vrcp.f32 %v3791_v27  ;;  %v3789_v48 = vadd.f32 1.0, %v4932_v55  ;;  %v3692_v42 = vsub.f32 0.0, %v6607_v11  ;;  %v6613_v1 = vadd.f32 %v6399_v34, %v3611_v23 }
 0x22b   : > { %v4936_v21 = vpop.eup %4935  ;;  %3889 = vst [vmem:[%s6504_s6 + $0x60] sm:$0xff] %v3853_v59  ;;  %v3856_v32 = vmul.f32 %v4934_v14, %v6475_v50  ;;  %4957 = vpow2.f32 %v3747_v30  ;;  %v6617_v0 = vadd.f32 %v6399_v34, %v3616_v29  ;;  %v6625_v60 = vadd.f32 %v6399_v34, %v3614_v47  ;;  %v3570_v46 = vpop.f32.mrf.mxu0 }
 0x22c   : > { %v4938_v56 = vpop.eup %4937  ;;  %v3854_v25 = vmul.f32 %v4936_v21, %v6486_v45  ;;  %4959 = vrcp.f32 %v3789_v48  ;;  %v3759_v50 = vmul.f32 1.442695, %v3692_v42  ;;  %v3690_v41 = vsub.f32 0.0, %v6613_v1 }
 0x22d   : > { %v4940_v58 = vpop.eup %4939  ;;  %3892 = vst [vmem:[%s6504_s6 + $0x78] sm:$0xff] %v3856_v32  ;;  %v3792_v53 = vadd.f32 1.0, %v4938_v56  ;;  %4961 = vpow2.f32 %v3757_v35  ;;  %v3695_v45 = vsub.f32 0.0, %v6617_v0  ;;  %v3617_v36 = vadd.f32 %v4742_v26, %v3303_v5 }
 0x22e   : > { %v4942_v8 = vpop.eup %4941  ;;  %3890 = vst [vmem:[%s6504_s6 + $0x68] sm:$0xff] %v3854_v25  ;;  %v3859_v15 = vmul.f32 %v4940_v58, %v6491_v16  ;;  %4963 = vpow2.f32 %v3753_v44  ;;  %v3755_v10 = vmul.f32 1.442695, %v3690_v41  ;;  %v3693_v16 = vsub.f32 0.0, %v6625_v60 }
 0x22f   : > { %v4944_v9 = vpop.eup %4943  ;;  %4965 = vrcp.f32 %v3792_v53  ;;  %v3790_v31 = vadd.f32 1.0, %v4942_v8  ;;  %v3765_v61 = vmul.f32 1.442695, %v3695_v45  ;;  %v6631_v18 = vadd.f32 %v6399_v34, %v3617_v36 }
 0x230   : > { %v4946_v20 = vpop.eup %4945  ;;  %3895 = vst [vmem:[%s6504_s6 + $0x90] sm:$0xff] %v3859_v15  ;;  %v3857_v3 = vmul.f32 %v4944_v9, %v6497_v4  ;;  %4967 = vpow2.f32 %v3759_v50  ;;  %v3615_v39 = vadd.f32 %v3570_v46, %v3301_v43  ;;  %v3761_v63 = vmul.f32 1.442695, %v3693_v16 }
 0x231   : > { %v4948_v33 = vpop.eup %4947  ;;  %4969 = vrcp.f32 %v3790_v31  ;;  %v3795_v38 = vadd.f32 1.0, %v4946_v20  ;;  %v3696_v17 = vsub.f32 0.0, %v6631_v18 }
 0x232   : > { %v4950_v2 = vpop.eup %4949  ;;  %3893 = vst [vmem:[%s6504_s6 + $0x80] sm:$0xff] %v3857_v3  ;;  %v3860_v5 = vmul.f32 %v4948_v33, %v6501_v52  ;;  %4971 = vpow2.f32 %v3755_v10  ;;  %v6637_v7 = vadd.f32 %v6399_v34, %v3615_v39 }
 0x233   : > { %4973 = vrcp.f32 %v3795_v38  ;;  %v3793_v4 = vadd.f32 1.0, %v4950_v2  ;;  %v4952_v49 = vpop.eup %4951  ;;  %v3767_v27 = vmul.f32 1.442695, %v3696_v17 }
 0x234   : > { %3896 = vst [vmem:[%s6504_s6 + $0x98] sm:$0xff] %v3860_v5  ;;  %4975 = vpow2.f32 %v3765_v61  ;;  %v4954_v62 = vpop.eup %4953  ;;  %v3858_v43 = vmul.f32 %v4952_v49, %v6519_v28  ;;  %v3694_v52 = vsub.f32 0.0, %v6637_v7 }
 0x235   : > { %4977 = vrcp.f32 %v3793_v4  ;;  %v3796_v30 = vadd.f32 1.0, %v4954_v62 }
 0x236   : > { %4979 = vpow2.f32 %v3761_v63  ;;  %3894 = vst [vmem:[%s6504_s6 + $0x88] sm:$0xff] %v3858_v43  ;;  %v3763_v55 = vmul.f32 1.442695, %v3694_v52 }
 0x237   : > { %v4956_v40 = vpop.eup %4955  ;;  %4981 = vpow2.f32 %v3767_v27 }
 0x238   : > { %v4958_v34 = vpop.eup %4957  ;;  %v3863_v59 = vmul.f32 %v4956_v40, %v6526_v54  ;;  %4983 = vrcp.f32 %v3796_v30 }
 0x239   : > { %v4960_v35 = vpop.eup %4959  ;;  %v3794_v23 = vadd.f32 1.0, %v4958_v34  ;;  %4985 = vpow2.f32 %v3763_v55 }
 0x23a   : > { %v4962_v28 = vpop.eup %4961  ;;  %3899 = vst [vmem:[%s6504_s6 + $0xb0] sm:$0xff] %v3863_v59  ;;  %v3861_v14 = vmul.f32 %v4960_v35, %v6529_v13 }
 0x23b   : > { %v4964_v48 = vpop.eup %4963  ;;  %4987 = vrcp.f32 %v3794_v23  ;;  %v3799_v44 = vadd.f32 1.0, %v4962_v28 }
 0x23c   : > { %v4966_v29 = vpop.eup %4965  ;;  %3897 = vst [vmem:[%s6504_s6 + $0xa0] sm:$0xff] %v3861_v14  ;;  %v3797_v26 = vadd.f32 1.0, %v4964_v48 }
 0x23d   : > { %v4968_v21 = vpop.eup %4967  ;;  %v3864_v32 = vmul.f32 %v4966_v29, %v6537_v22  ;;  %4989 = vrcp.f32 %v3799_v44 }
 0x23e   : > { %v4970_v54 = vpop.eup %4969  ;;  %4991 = vrcp.f32 %v3797_v26  ;;  %v3800_v42 = vadd.f32 1.0, %v4968_v21 }
 0x23f   : > { %v4972_v56 = vpop.eup %4971  ;;  %3900 = vst [vmem:[%s6504_s6 + $0xb8] sm:$0xff] %v3864_v32  ;;  %v3862_v25 = vmul.f32 %v4970_v54, %v6556_v37 }
 0x240   : > { %v4974_v13 = vpop.eup %4973  ;;  %4993 = vrcp.f32 %v3800_v42  ;;  %v3798_v47 = vadd.f32 1.0, %v4972_v56 }
 0x241   : > { %v4976_v58 = vpop.eup %4975  ;;  %3898 = vst [vmem:[%s6504_s6 + $0xa8] sm:$0xff] %v3862_v25  ;;  %v3867_v53 = vmul.f32 %v4974_v13, %v6563_v12 }
 0x242   : > { %v4978_v50 = vpop.eup %4977  ;;  %4995 = vrcp.f32 %v3798_v47  ;;  %v3803_v22 = vadd.f32 1.0, %v4976_v58 }
 0x243   : > { %v4980_v41 = vpop.eup %4979  ;;  %3903 = vst [vmem:[%s6504_s6 + $0xd0] sm:$0xff] %v3867_v53  ;;  %v3865_v8 = vmul.f32 %v4978_v50, %v6567_v6 }
 0x244   : > { %v4982_v15 = vpop.eup %4981  ;;  %4997 = vrcp.f32 %v3803_v22  ;;  %v3801_v37 = vadd.f32 1.0, %v4980_v41 }
 0x245   : > { %v4984_v45 = vpop.eup %4983  ;;  %3901 = vst [vmem:[%s6504_s6 + $0xc0] sm:$0xff] %v3865_v8  ;;  %v3804_v46 = vadd.f32 1.0, %v4982_v15 }
 0x246   : > { %v4986_v9 = vpop.eup %4985  ;;  %v3868_v12 = vmul.f32 %v4984_v45, %v6579_v57  ;;  %4999 = vrcp.f32 %v3801_v37 }
 0x247   : > { %5001 = vrcp.f32 %v3804_v46  ;;  %v3802_v31 = vadd.f32 1.0, %v4986_v9 }
 0x248   : > { %v4988_v10 = vpop.eup %4987  ;;  %3904 = vst [vmem:[%s6504_s6 + $0xd8] sm:$0xff] %v3868_v12 }
 0x249   : > { %v3866_v6 = vmul.f32 %v4988_v10, %v6589_v19  ;;  %5003 = vrcp.f32 %v3802_v31 }
 0x24a   : > { %v4990_v36 = vpop.eup %4989 }
 0x24b   : > { %v4992_v20 = vpop.eup %4991  ;;  %3902 = vst [vmem:[%s6504_s6 + $0xc8] sm:$0xff] %v3866_v6  ;;  %v3871_v3 = vmul.f32 %v4990_v36, %v6592_v51 }
 0x24c   : > { %v3869_v61 = vmul.f32 %v4992_v20, %v6597_v24 }
 0x24d   : > { %v4994_v57 = vpop.eup %4993  ;;  %3907 = vst [vmem:[%s6504_s6 + $0xf0] sm:$0xff] %v3871_v3 }
 0x24e   : > { %3905 = vst [vmem:[%s6504_s6 + $0xe0] sm:$0xff] %v3869_v61  ;;  %v3872_v16 = vmul.f32 %v4994_v57, %v6607_v11 }
 0x24f   : > { %v4996_v33 = vpop.eup %4995 }
 0x250   : > { %3908 = vst [vmem:[%s6504_s6 + $0xf8] sm:$0xff] %v3872_v16  ;;  %v3870_v19 = vmul.f32 %v4996_v33, %v6613_v1 }
 0x251   : > { %v4998_v38 = vpop.eup %4997 }
 0x252   : > { %3906 = vst [vmem:[%s6504_s6 + $0xe8] sm:$0xff] %v3870_v19  ;;  %v3875_v51 = vmul.f32 %v4998_v38, %v6617_v0 }
 0x253   : > { %v5000_v24 = vpop.eup %4999 }
 0x254   : > { %v5002_v39 = vpop.eup %5001  ;;  %3911 = vst [vmem:[%s6504_s6 + $0x110] sm:$0xff] %v3875_v51  ;;  %v3873_v2 = vmul.f32 %v5000_v24, %v6625_v60 }
 0x255   : > { %v3876_v11 = vmul.f32 %v5002_v39, %v6631_v18 }
 0x256   : > { %v5004_v5 = vpop.eup %5003  ;;  %3909 = vst [vmem:[%s6504_s6 + $0x100] sm:$0xff] %v3873_v2 }
 0x257   : > { %3912 = vst [vmem:[%s6504_s6 + $0x118] sm:$0xff] %v3876_v11  ;;  %v3874_v1 = vmul.f32 %v5004_v5, %v6637_v7 }
 0x259   : > { %3910 = vst [vmem:[%s6504_s6 + $0x108] sm:$0xff] %v3874_v1 }
 0x25a   : > { %5018 = shalt.err (!%p5015_p3)
}
 0x25b   : > { %s5019_s25 = scalar_lea.hbm %s6677_s11, 4608  ;;  %s5023_s28 = scalar_lea.hbm %s6729_s3, 9216 }
 0x25c   : > { %p5020_p4 = scmp.ne.s32.totalorder %s6677_s11, %s5019_s25  ;;  %p5024_p9 = scmp.lt.s32.totalorder %s6677_s11, %s6729_s3 }
 0x25d   : > { %p5025_p10 = scmp.lt.s32.totalorder %s5023_s28, %s5019_s25 }
 0x25e   : > { %p5021_p7 = pnand %p5020_p4, %p5128_p5 }
 0x25f   : > { %p5026_p11 = por %p5025_p10, %p5024_p9 }
 0x260   : > { %p5022_p8 = pneg %p5021_p7 }
 0x262   : > { %p5027_p12 = pnand %p5026_p11, %p5022_p8 }
 0x264   : > { %5030 = shalt.err (!%p5027_p12)
}
 0x265   : > { %s5068_s4 = smov 128   ;;  %s5069_s5 = smov 8  }
 0x266   : > { %4758 = dma.vmem_to_hbm [thread:$0]  (%p5128_p5), %s6681_s8, 4608, %s6677_s11, %s6686_s16, %s5068_s4, %s5068_s4, %s5069_s5  }
 0x267 PF: > { %p4764_p13 = scmp.ge.s32.totalorder %s5065_s15, 2  ;;  %s3942_s6 = sand.u32 1, %s5053_s12  }
 0x268   : > { %s3943_s7 = scalar_lea.sflag [#allocation3], %s3942_s6 }
 0x269   : > { %p4761_p0 = pnand %p4764_p13, %p5132_p6 }
 0x26b   : > { %p4762_p1 = pneg %p4761_p0 }
 0x26d   : > { %5048 = dma.done.wait (%p4762_p1), %s3943_s7, 4608  }
 0x26e   : > { %5050 = vsyncadd (%p4762_p1), %s3943_s7, 4294962688  ;;  %p13_p2 = scmp.ge.s32.totalorder %s5115_s18, 4   ;;  %s6770_s12 = smov %s5057_s13 }
 0x26f   : > { %s6771_s13 = smov %s5061_s14  ;;  %s6772_s14 = smov %s5126_s21 }
 0x270   : > { %s6773_s15 = smov %s5115_s18  ;;  %15 = sbr.rel (!%p13_p2) target bundleno = 3 (0x3), region = 75 }
 0x275   :  { %3948 = vsyncpa [#allocation3], 1 }
 0x276   :  { %3950 = vsyncpa [#allocation3 + $0x1], 1 }

</bundles_post_ra>
